<compile_context>
chip_gen: v6e
topology: v6e:2x2x1
jax: 0.10.0
libtpu: 0.0.40
codegen_flags: <defaults>
</compile_context>

<pallas_src>
import functools
import math

import jax
import jax.numpy as jnp
from jax.experimental import pallas as pl
from jax.experimental.pallas import tpu as pltpu


def _round_up(n, m):
    return ((n + m - 1) // m) * m


def _lossA_kernel(db_ref, x_ref, dw_ref, labels_ref, out_ref, *,
                  n_total, tile_n, steps_per_core):
    # db_ref:     (1,)               f32 SMEM  (b[1] - b[0])
    # x_ref:      (TILE_N, 128)      f32/bf16  pipelined x tile
    # dw_ref:     (1, 128)           f32       (W[1] - W[0]), resident
    # labels_ref: (TILE_N//128, 128) f32       dense labels tile ({0,1})
    # out_ref:    (8, 128)           f32       per-core partial-sum block (resident)
    c = pl.program_id(0)          # TensorCore split ("parallel")
    i = pl.program_id(1)          # batch tiles ("arbitrary", reduction axis)

    @pl.when(i == 0)
    def _init():
        out_ref[...] = jnp.zeros_like(out_ref)

    g = tile_n // 128
    x = x_ref[...].astype(jnp.float32)                     # (TILE_N, 128)
    x3 = x.reshape(g, 128, x.shape[-1])                    # free, tile-aligned view
    dw = dw_ref[...].astype(jnp.float32)                   # (1, 128)

    # Binary-logit margin, lane-dense: z[gi, l] = x[gi*128 + l, :] . dw + db
    z = jnp.sum(x3 * dw, axis=-1) + db_ref[0]              # (g, 128)

    # Stable softplus: log(1 + exp(z)) = max(z, 0) + log1p(exp(-|z|))
    softplus = jnp.maximum(z, 0.0) + jnp.log1p(jnp.exp(-jnp.abs(z)))
    per_example = softplus - labels_ref[...] * z           # (g, 128)

    # Row-validity mask: zeroes the padded rows of the ragged last tile and the
    # clamped overhang tile of the second core.  Cheap on the dense layout and
    # NaN-safe (jnp.where never selects the garbage branch).
    tile_idx = c * steps_per_core + i                      # unclamped tile index
    row = (tile_idx * tile_n
           + jax.lax.broadcasted_iota(jnp.int32, (g, 128), 0) * 128
           + jax.lax.broadcasted_iota(jnp.int32, (g, 128), 1))
    per_example = jnp.where(row < n_total, per_example, 0.0)

    out_ref[...] += jnp.sum(per_example)                   # scalar broadcast add


def lossA_forward(x, labels, W, b, *, tile_n=8192):
    """x: (N, 1, 128), labels: (N,) int, W: (2, 128), b: (2,). Returns scalar f32."""
    x2 = jnp.squeeze(x, axis=1)                            # (N, 128)
    if x2.dtype != jnp.bfloat16:                           # keep bf16, upcast in-kernel
        x2 = x2.astype(jnp.float32)
    n, d = x2.shape

    # 2-class reduction of the linear layer.
    dw = (W[1] - W[0]).reshape(1, d).astype(jnp.float32)   # (1, 128)
    db = (b[1] - b[0]).reshape(1).astype(jnp.float32)      # (1,) -> SMEM scalar

    # Tile size: 8192 rows (4 MiB f32, 8 MiB double-buffered) amortizes
    # per-step overhead on all generations; tiny batches collapse to one
    # 128-row-aligned tile.  Multi-tile runs keep TILE_N a multiple of 1024 so
    # the dense labels block stays (8,128)-aligned.
    if n <= tile_n:
        tn = _round_up(n, 128)
    else:
        tn = _round_up(tile_n, 1024)
    num_tiles = -(-n // tn)
    steps_per_core = -(-num_tiles // 2)                    # 2-way TensorCore split
    g = tn // 128

    # Labels (tiny): pad to a whole number of tiles and lay out lane-dense.
    n_lbl = num_tiles * tn
    labels_f = labels.astype(jnp.float32)
    labels_f = jnp.pad(labels_f, (0, n_lbl - n)).reshape(n_lbl // 128, 128)

    kernel = functools.partial(_lossA_kernel, n_total=n, tile_n=tn,
                               steps_per_core=steps_per_core)

    def tile_map(c, i, db_ref):
        # Clamp so the second core's overhang tile stays in bounds; its
        # contribution is zeroed by the in-kernel row mask.
        return (jnp.minimum(c * steps_per_core + i, num_tiles - 1), 0)

    partial = pl.pallas_call(
        kernel,
        out_shape=jax.ShapeDtypeStruct((16, 128), jnp.float32),
        grid_spec=pltpu.PrefetchScalarGridSpec(
            num_scalar_prefetch=1,                               # db -> SMEM
            grid=(2, steps_per_core),
            in_specs=[
                pl.BlockSpec((tn, d), tile_map),                 # x tile (pipelined)
                pl.BlockSpec((1, d), lambda c, i, db: (0, 0)),   # dw (resident)
                pl.BlockSpec((g, 128), tile_map),                # labels tile (dense)
            ],
            out_specs=pl.BlockSpec((8, 128), lambda c, i, db: (c, 0)),
        ),
        compiler_params=pltpu.CompilerParams(
            dimension_semantics=("parallel", "arbitrary"),
        ),
    )(db, x2, dw, labels_f)

    # Per-core partial sums live at rows 0 and 8; reduce and take the global mean.
    return (partial[0, 0] + partial[8, 0]) / n


def init_params(key):
    """Deterministic init mimicking nn.Linear(128, 2) default (uniform +-1/sqrt(128))."""
    k_w, k_b = jax.random.split(key)
    bound = 1.0 / math.sqrt(128.0)
    W = jax.random.uniform(k_w, (2, 128), jnp.float32, -bound, bound)
    b = jax.random.uniform(k_b, (2,), jnp.float32, -bound, bound)
    return W, b


def _reference_loss(x, labels, W, b):
    logits = jnp.squeeze(x, 1).astype(jnp.float32) @ W.T + b
    logz = jax.scipy.special.logsumexp(logits, axis=-1)
    picked = jnp.take_along_axis(logits, labels[:, None].astype(jnp.int32), axis=-1)[:, 0]
    return jnp.mean(logz - picked)


if __name__ == "__main__":
    key = jax.random.PRNGKey(0)
    k_x, k_lbl, k_param, k_x2, k_lbl2 = jax.random.split(key, 5)
    W, b = init_params(k_param)

    # Small case: single partial tile; second core's duplicate tile fully masked.
    N = 8
    x = jax.random.normal(k_x, (N, 1, 128), jnp.float32)
    labels = jax.random.randint(k_lbl, (N,), 0, 2, jnp.int32)
    loss = jax.block_until_ready(lossA_forward(x, labels, W, b))
    ref = _reference_loss(x, labels, W, b)
    assert jnp.allclose(loss, ref, atol=1e-5, rtol=1e-5), (loss, ref)

    # Multi-tile, odd tile count, ragged last tile: exercises the 2-core split,
    # the clamped overhang tile and the row-validity mask.
    N2 = 2500
    x_big = jax.random.normal(k_x2, (N2, 1, 128), jnp.float32)
    labels_big = jax.random.randint(k_lbl2, (N2,), 0, 2, jnp.int32)
    loss_big = jax.block_until_ready(lossA_forward(x_big, labels_big, W, b, tile_n=1024))
    ref_big = _reference_loss(x_big, labels_big, W, b)
    assert jnp.allclose(loss_big, ref_big, atol=1e-5, rtol=1e-5), (loss_big, ref_big)

    print("KERNEL_OK")
</pallas_src>

<mosaic_0001>
module attributes {stable_mosaic.version = 11 : i64} {
  func.func @_lossA_kernel(%arg0: i32, %arg1: i32, %arg2: memref<1xf32, #tpu.memory_space<smem>>, %arg3: memref<128x128xf32, #tpu.memory_space<vmem>>, %arg4: memref<1x128xf32, #tpu.memory_space<vmem>>, %arg5: memref<1x128xf32, #tpu.memory_space<vmem>>, %arg6: memref<8x128xf32, #tpu.memory_space<vmem>>) attributes {dimension_semantics = [#tpu.dimension_semantics<parallel>, #tpu.dimension_semantics<arbitrary>], iteration_bounds = array<i64: 2, 1>, scalar_prefetch = 1 : i64, scratch_operands = 0 : i64, tpu.core_type = #tpu.core_type<tc>, window_params = [{transform_indices = @transform_0, window_bounds = array<i64: 128, 128>}, {pipeline_mode = #tpu.pipeline_mode<synchronous>, transform_indices = @transform_1, window_bounds = array<i64: 1, 128>}, {transform_indices = @transform_2, window_bounds = array<i64: 1, 128>}, {transform_indices = @transform_3, window_bounds = array<i64: 8, 128>}]} {
    %c0_i32 = arith.constant 0 : i32
    %0 = arith.cmpi eq, %arg1, %c0_i32 : i32
    %1 = arith.extui %0 : i1 to i32
    %c0_i32_0 = arith.constant 0 : i32
    %2 = arith.cmpi ne, %1, %c0_i32_0 : i32
    scf.if %2 {
      %cst_16 = arith.constant 0.000000e+00 : f32
      %46 = vector.broadcast %cst_16 : f32 to vector<8x128xf32>
      %c0_17 = arith.constant 0 : index
      %c0_18 = arith.constant 0 : index
      %47 = vector.load %arg6[%c0_17, %c0_18] : memref<8x128xf32, #tpu.memory_space<vmem>>, vector<8x128xf32>
      tpu.vector_store %arg6[%c0_17, %c0_18], %46 {strides = array<i32>} : memref<8x128xf32, #tpu.memory_space<vmem>>, vector<8x128xf32>,
    } else {
    }
    %c0 = arith.constant 0 : index
    %c0_1 = arith.constant 0 : index
    %3 = vector.load %arg3[%c0, %c0_1] : memref<128x128xf32, #tpu.memory_space<vmem>>, vector<128x128xf32>
    %4 = vector.shape_cast %3 : vector<128x128xf32> to vector<1x128x128xf32>
    %c0_2 = arith.constant 0 : index
    %c0_3 = arith.constant 0 : index
    %5 = vector.load %arg4[%c0_2, %c0_3] : memref<1x128xf32, #tpu.memory_space<vmem>>, vector<1x128xf32>
    %6 = vector.shape_cast %5 : vector<1x128xf32> to vector<1x1x128xf32>
    %7 = vector.broadcast %6 : vector<1x1x128xf32> to vector<1x128x128xf32>
    %8 = arith.mulf %4, %7 : vector<1x128x128xf32>
    %cst = arith.constant dense<0.000000e+00> : vector<1x128xf32>
    %9 = vector.multi_reduction <add>, %8, %cst [2] : vector<1x128x128xf32> to vector<1x128xf32>
    %c0_4 = arith.constant 0 : index
    %10 = memref.load %arg2[%c0_4] : memref<1xf32, #tpu.memory_space<smem>>
    %11 = vector.broadcast %10 : f32 to vector<1x128xf32>
    %12 = arith.addf %9, %11 : vector<1x128xf32>
    %cst_5 = arith.constant 0.000000e+00 : f32
    %13 = vector.broadcast %cst_5 : f32 to vector<1x128xf32>
    %14 = arith.maximumf %12, %13 : vector<1x128xf32>
    %15 = math.absf %12 : vector<1x128xf32>
    %cst_6 = arith.constant 0.000000e+00 : f32
    %16 = vector.broadcast %cst_6 : f32 to vector<1x128xf32>
    %17 = arith.subf %16, %15 : vector<1x128xf32>
    %18 = math.exp %17 : vector<1x128xf32>
    %19 = math.log1p %18 : vector<1x128xf32>
    %20 = arith.addf %14, %19 : vector<1x128xf32>
    %c0_7 = arith.constant 0 : index
    %c0_8 = arith.constant 0 : index
    %21 = vector.load %arg5[%c0_7, %c0_8] : memref<1x128xf32, #tpu.memory_space<vmem>>, vector<1x128xf32>
    %22 = arith.mulf %21, %12 : vector<1x128xf32>
    %23 = arith.subf %20, %22 : vector<1x128xf32>
    %c1_i32 = arith.constant 1 : i32
    %24 = arith.muli %arg0, %c1_i32 : i32
    %25 = arith.addi %24, %arg1 : i32
    %c128_i32 = arith.constant 128 : i32
    %26 = arith.muli %25, %c128_i32 : i32
    %27 = tpu.iota {dimensions = array<i32: 0>} : vector<1x128xi32>
    %c128_i32_9 = arith.constant 128 : i32
    %28 = vector.broadcast %c128_i32_9 : i32 to vector<1x128xi32>
    %29 = arith.muli %27, %28 : vector<1x128xi32>
    %30 = vector.broadcast %26 : i32 to vector<1x128xi32>
    %31 = arith.addi %30, %29 : vector<1x128xi32>
    %32 = tpu.iota {dimensions = array<i32: 1>} : vector<1x128xi32>
    %33 = arith.addi %31, %32 : vector<1x128xi32>
    %c8_i32 = arith.constant 8 : i32
    %34 = vector.broadcast %c8_i32 : i32 to vector<1x128xi32>
    %35 = arith.cmpi slt, %33, %34 : vector<1x128xi32>
    %cst_10 = arith.constant 0.000000e+00 : f32
    %36 = vector.broadcast %cst_10 : f32 to vector<1x128xf32>
    %37 = arith.select %35, %23, %36 : vector<1x128xi1>, vector<1x128xf32>
    %c0_11 = arith.constant 0 : index
    %c0_12 = arith.constant 0 : index
    %38 = vector.load %arg6[%c0_11, %c0_12] : memref<8x128xf32, #tpu.memory_space<vmem>>, vector<8x128xf32>
    %39 = vector.shape_cast %37 : vector<1x128xf32> to vector<1x1x128xf32>
    %cst_13 = arith.constant dense<0.000000e+00> : vector<1xf32>
    %40 = vector.multi_reduction <add>, %39, %cst_13 [1, 2] : vector<1x1x128xf32> to vector<1xf32>
    %41 = vector.shape_cast %40 : vector<1xf32> to vector<1x1x1xf32>
    %42 = vector.extract %41[0, 0, 0] : f32 from vector<1x1x1xf32>
    %43 = vector.broadcast %42 : f32 to vector<8x128xf32>
    %44 = arith.addf %38, %43 : vector<8x128xf32>
    %c0_14 = arith.constant 0 : index
    %c0_15 = arith.constant 0 : index
    %45 = vector.load %arg6[%c0_14, %c0_15] : memref<8x128xf32, #tpu.memory_space<vmem>>, vector<8x128xf32>
    tpu.vector_store %arg6[%c0_14, %c0_15], %44 {strides = array<i32>} : memref<8x128xf32, #tpu.memory_space<vmem>>, vector<8x128xf32>,
    return
  }
  func.func @transform_0(%arg0: i32, %arg1: i32, %arg2: memref<1xf32, #tpu.memory_space<smem>>) -> (i32, i32) {
    %c1_i32 = arith.constant 1 : i32
    %0 = arith.muli %arg0, %c1_i32 : i32
    %1 = arith.addi %0, %arg1 : i32
    %c0_i32 = arith.constant 0 : i32
    %2 = arith.minsi %1, %c0_i32 : i32
    %c0_i32_0 = arith.constant 0 : i32
    %c0_i32_1 = arith.constant 0 : i32
    return %2, %c0_i32_0 : i32, i32
  }
  func.func @transform_1(%arg0: i32, %arg1: i32, %arg2: memref<1xf32, #tpu.memory_space<smem>>) -> (i32, i32) {
    %c0_i32 = arith.constant 0 : i32
    %c0_i32_0 = arith.constant 0 : i32
    %c0_i32_1 = arith.constant 0 : i32
    return %c0_i32, %c0_i32_0 : i32, i32
  }
  func.func @transform_2(%arg0: i32, %arg1: i32, %arg2: memref<1xf32, #tpu.memory_space<smem>>) -> (i32, i32) {
    %c1_i32 = arith.constant 1 : i32
    %0 = arith.muli %arg0, %c1_i32 : i32
    %1 = arith.addi %0, %arg1 : i32
    %c0_i32 = arith.constant 0 : i32
    %2 = arith.minsi %1, %c0_i32 : i32
    %c0_i32_0 = arith.constant 0 : i32
    %c0_i32_1 = arith.constant 0 : i32
    return %2, %c0_i32_0 : i32, i32
  }
  func.func @transform_3(%arg0: i32, %arg1: i32, %arg2: memref<1xf32, #tpu.memory_space<smem>>) -> (i32, i32) {
    %c0_i32 = arith.constant 0 : i32
    %c0_i32_0 = arith.constant 0 : i32
    return %arg0, %c0_i32 : i32, i32
  }
}

</mosaic_0001>

<bundles_post_ra>
// kernel: tpu_custom_call.1
= control target key start
LH: loop header
LB: loop body
LE: loop exit
PB: predicated region body
PF: predicated region fallthrough
CT: control target
= control target key end

     0   :  { %s3802_s0 = inlined_call_operand.<no memory space> [shape: f32[1], index: 0, kind: input, shape index: {}]   ;;  %s3803_s1 = inlined_call_operand.hbm [shape: f32[8,128], index: 1, kind: input, shape index: {}]   ;;  %s3804_s2 = inlined_call_operand.vmem [shape: f32[1,128], index: 2, kind: input, shape index: {}]   ;;  %s3805_s3 = inlined_call_operand.vmem [shape: f32[1,128], index: 3, kind: input, shape index: {}]   ;;  %s3806_s4 = inlined_call_operand.hbm [shape: f32[16,128], index: 4, kind: output, shape index: {}]  }
   0x1   :  { %9 = sst [smem:[#allocation3]] %s3802_s0 }
   0x2   :  { %10 = vsyncpa [#allocation5], 0 }
   0x3   :  { %12 = vsyncpa [#allocation5 + $0x1], 0 }
   0x4   :  { %13 = vsyncpa [#allocation6], 0 }
   0x5   :  { %15 = vsyncpa [#allocation6 + $0x1], 0  ;;  %s2791_s17 = smov 0   ;;  %s2793_s18 = smov 0  }
   0x6   :  { %s2795_s19 = smov 0   ;;  %s2797_s20 = smov 0  }
   0x7   :  { %s2799_s21 = smov 0   ;;  %s2801_s22 = smov 0  }
   0x8   :  { %s2803_s23 = smov 0   ;;  %s2805_s24 = smov 0  }
   0x9 LB: > { %s2449_s0 = sadd.s32 4294967295, %s2755_s24   ;;  %s2450_s25 = sadd.s32 4294967294, %s2755_s24   ;;  %s2755_s24 = sphi %s2805_s24, %s21_s24   ;;  %s2751_s23 = sphi %s2803_s23, %s3911_s23   ;;  %s2747_s22 = sphi %s2801_s22, %s3910_s22   ;;  %s2743_s21 = sphi %s2799_s21, %s3792_s21   ;;  %s2739_s20 = sphi %s2797_s20, %s3909_s20   ;;  %s2735_s19 = sphi %s2795_s19, %s3908_s19   ;;  %s2731_s18 = sphi %s2793_s18, %s3907_s18   ;;  %s2727_s17 = sphi %s2791_s17, %s3906_s17  }
   0xa   : > { %s33_s26 = sadd.s32 1, %s2751_s23  ;;  %p2724_p1 = scmp.ne.s32.totalorder %s2743_s21, 0 }
   0xb   : > { %p35_p0 = scmp.ge.s32.totalorder %s33_s26, 2  ;;  %p54_p2 = scmp.eq.s32.totalorder %s2755_s24, 0 }
   0xc   : > { %p59_p3 = scmp.ne.s32.totalorder %s2743_s21, %s2739_s20  ;;  %p60_p5 = scmp.eq.s32.totalorder %s2449_s0, 0 }
   0xd   : > { %s3913_s26 = smov (%p35_p0, %s33_s26), 0  ;;  %p2837_p4 = por %p2724_p1, %p54_p2 }
   0xe   : > { %p2841_p6 = por %p60_p5, %p59_p3  ;;  %s122_s29 = ssub.s32 %s2751_s23, %s3913_s26 }
   0xf   : > { %p123_p7 = scmp.eq.s32.totalorder %s122_s29, 0  ;;  %s125_s30 = sadd.s32 1, %s2735_s19 }
  0x10   : > { %p135_p8 = scmp.ne.s32.totalorder %s2735_s19, %s2731_s18  ;;  %p136_p9 = scmp.eq.s32.totalorder %s2449_s0, 1 }
  0x11   : > { %s2849_s5 = scalar_select %p123_p7, %s2735_s19, %s125_s30  }
  0x12   : > { %p141_p10 = scmp.ne.s32.totalorder %s2731_s18, %s2727_s17  ;;  %p142_p11 = scmp.eq.s32.totalorder %s2450_s25, 1 }
  0x13   : > { %p2855_p12 = por %p136_p9, %p135_p8  ;;  %p3826_p0 = scmp.ge.s32.totalorder %s2755_s24, 2 }
  0x14   : > { %p2859_p13 = por %p142_p11, %p141_p10 }
  0x15   : > { %161 = sbr.rel (%p3826_p0) target bundleno = 49 (0x31), region = 20 }
  0x1a   : > { %164 = sbr.rel (!%p2837_p4) target bundleno = 49 (0x31), region = 24 }
  0x1f   : > { %178 = vsyncadd [#allocation5], 1920  ;;  %s2757_s8 = smov [#allocation4]   ;;  %s2626_s12 = scalar_lea.hbm %s3803_s1, 128 }
  0x20   : > { %s183_s9 = sshll.u32 %s2757_s8, 4  ;;  %p2627_p1 = scmp.ne.s32.totalorder %s3803_s1, %s2626_s12  ;;  %s184_s9 = int_to_ptr.vmem [resolvable:$true] %s183_s9 }
  0x21   : > { %p2632_p2 = scmp.lt.s32.totalorder %s2626_s12, %s2626_s12 }
  0x23   : > { %p2634_p3 = pnand %p2632_p2, %p2627_p1 }
  0x25   : > { %2637 = shalt.err (!%p2634_p3)
}
  0x26   : > { %s2638_s15 = scalar_lea.vmem %s184_s9, 128  ;;  %s2644_s16 = scalar_lea.vmem %s184_s9, 4096 }
  0x27   : > { %p2639_p5 = scmp.ne.s32.totalorder %s184_s9, %s2638_s15  ;;  %p2645_p7 = scmp.lt.s32.totalorder %s184_s9, %s184_s9 }
  0x28   : > { %p2646_p4 = scmp.lt.s32.totalorder %s2644_s16, %s2638_s15 }
  0x2a   : > { %p2647_p8 = por %p2646_p4, %p2645_p7 }
  0x2c   : > { %p2648_p9 = pnand %p2647_p8, %p2639_p5 }
  0x2e   : > { %2651 = shalt.err (!%p2648_p9)
}
  0x2f   : > { %s2758_s20 = smov 128   ;;  %s2759_s0 = smov 8  }
  0x30   : > { %189 = dma.hbm_to_vmem [thread:$0]  %s3803_s1, 128, %s184_s9, [#allocation5], %s2758_s20, %s2758_s20, %s2759_s0  }
  0x31 PF: > { %p2460_p10 = scmp.ge.s32.totalorder %s2755_s24, 1  ;;  %p203_p11 = scmp.lt.s32.totalorder %s2755_s24, 3 }
  0x33   : > { %p204_p1 = pnand %p2460_p10, %p203_p11 }
  0x35   : > { %207 = sbr.rel (%p204_p1) target bundleno = 925 (0x39d), region = 32 }
  0x3a   : > { %s209_s29 = sand.u32 1, %s2743_s21  }
  0x3b   : > { %s2461_s30 = sshll.u32 %s209_s29, 7  ;;  %s210_s8 = scalar_lea.sflag [#allocation5], %s209_s29 }
  0x3c   : > { %s2880_s10 = scalar_lea.vmem [#allocation4], %s2461_s30 }
  0x3d   : > { %2715 = dma.done.wait (%p2841_p6), %s210_s8, 2048  }
  0x3e   : > { %2717 = vsyncadd (%p2841_p6), %s210_s8, 4294965248  ;;  %v264_v0 = vld [vmem:[%s2880_s10 + $0x10] sm:$0xff]  ;;  %v2466_v1 = vld [vmem:[%s3804_s2] ss:$0 sm:$0xff]  ;;  %v2760_v33 = vmov 0   ;;  %s333_s28 = sld [smem:[#allocation3]]  ;;  %v608_v34 = vlaneseq }
  0x3f   : > { %v262_v2 = vld [vmem:[%s2880_s10] sm:$0xff]  ;;  %v287_v3 = vmul.f32 %v2466_v1, %v264_v0  ;;  %v265_v5 = vld [vmem:[%s2880_s10 + $0x18] sm:$0xff]  ;;  %v263_v6 = vld [vmem:[%s2880_s10 + $0x8] sm:$0xff]  ;;  %2560 = vset.pattern.permute.xlu0 %v2760_v33  ;;  %2561 = vset.pattern.permute.xlu1 %v2760_v33  ;;  %v2761_v36 = vmov 1966171168   ;;  %vm1963_vm0 = vcmask 130112  }
  0x40   : > { %v285_v4 = vmul.f32 %v2466_v1, %v262_v2  ;;  %v288_v7 = vmul.f32 %v2466_v1, %v265_v5  ;;  %v286_v8 = vmul.f32 %v2466_v1, %v263_v6  ;;  %v267_v9 = vld [vmem:[%s2880_s10 + $0x28] sm:$0xff]  ;;  %v266_v10 = vld [vmem:[%s2880_s10 + $0x20] sm:$0xff]  ;;  %v269_v13 = vld [vmem:[%s2880_s10 + $0x38] sm:$0xff]  ;;  %v2906_v35 = vshrl.u32 %v608_v34, 7  ;;  %p249_p6 = scmp.lt.s32.totalorder %s2747_s22, 0  ;;  %s2467_s16 = sshll.u32 %s2747_s22, 7 }
  0x41   : > { %305 = vadd.xlane.f32.xlu1 %v287_v3  ;;  %v290_v11 = vmul.f32 %v2466_v1, %v267_v9  ;;  %v289_v12 = vmul.f32 %v2466_v1, %v266_v10  ;;  %v268_v14 = vld [vmem:[%s2880_s10 + $0x30] sm:$0xff]  ;;  %v292_v15 = vmul.f32 %v2466_v1, %v269_v13  ;;  %v271_v17 = vld [vmem:[%s2880_s10 + $0x48] sm:$0xff]  ;;  %v270_v18 = vld [vmem:[%s2880_s10 + $0x40] sm:$0xff]  ;;  %v1125_v37 = vunpack.c.l.s4 %v2761_v36  ;;  %s239_s20 = sand.u32 1, %s2731_s18  }
  0x42   : > { %301 = vadd.xlane.f32.xlu0 %v285_v4  ;;  %v291_v16 = vmul.f32 %v2466_v1, %v268_v14  ;;  %v294_v19 = vmul.f32 %v2466_v1, %v271_v17  ;;  %v293_v20 = vmul.f32 %v2466_v1, %v270_v18  ;;  %v273_v21 = vld [vmem:[%s2880_s10 + $0x58] sm:$0xff]  ;;  %v272_v22 = vld [vmem:[%s2880_s10 + $0x50] sm:$0xff]  ;;  %v275_v25 = vld [vmem:[%s2880_s10 + $0x68] sm:$0xff]  ;;  %3831 = vst [vmem:[#allocation10_spill] sm:$0xff] %v2906_v35  ;;  %v2911_v39 = vsub.s32 0, %v2906_v35  ;;  %s250_s12 = scalar_select %p249_p6, %s2747_s22, 0 }
  0x43   : > { %v296_v23 = vmul.f32 %v2466_v1, %v273_v21  ;;  %v295_v24 = vmul.f32 %v2466_v1, %v272_v22  ;;  %v274_v26 = vld [vmem:[%s2880_s10 + $0x60] sm:$0xff]  ;;  %v298_v27 = vmul.f32 %v2466_v1, %v275_v25  ;;  %v277_v29 = vld [vmem:[%s2880_s10 + $0x78] sm:$0xff]  ;;  %v276_v30 = vld [vmem:[%s2880_s10 + $0x70] sm:$0xff]  ;;  %v2914_v40 = vsub.s32 1, %v2906_v35  ;;  %s2462_s0 = sshll.u32 %s239_s20, 3  ;;  %s2360_s10 = scalar_lea.hbm %s3806_s4, %s2467_s16 }
  0x44   : > { %v297_v28 = vmul.f32 %v2466_v1, %v274_v26  ;;  %v300_v31 = vmul.f32 %v2466_v1, %v277_v29  ;;  %v299_v32 = vmul.f32 %v2466_v1, %v276_v30  ;;  %v2908_v38 = vstv %s333_s28  ;;  %s3915_s12 = smov (!%p249_p6, %s250_s12), 0  ;;  %s241_s25 = scalar_lea.vmem [#allocation7], %s2462_s0 }
  0x45   : > { %307 = vadd.xlane.f32.xlu1 %v288_v7  ;;  %v1126_v41 = vunpack.c.0.s8 %v1125_v37  ;;  %v2917_v44 = vsub.s32 2, %v2906_v35  ;;  %v2920_v45 = vsub.s32 3, %v2906_v35  ;;  %v2923_v46 = vsub.s32 4, %v2906_v35  ;;  %s253_s15 = scalar_lea.vmem %s3805_s3, %s3915_s12  ;;  %s2362_s27 = sshll.u32 %s241_s25, 4  ;;  %s2363_s27 = int_to_ptr.vmem [resolvable:$true] %s2362_s27 }
  0x46   : > { %303 = vadd.xlane.f32.xlu0 %v286_v8  ;;  %v2926_v47 = vsub.s32 5, %v2906_v35  ;;  %v2932_v49 = vsub.s32 6, %v2906_v35  ;;  %v2935_v50 = vsub.s32 7, %v2906_v35  ;;  %vm1970_vm1 = vcmask 195712   ;;  %s2349_s9 = scalar_lea.sflag [#allocation6], %s239_s20  ;;  %s2652_s11 = scalar_lea.vmem %s2363_s27, 128 }
  0x47   : > { %v2942_v53 = vsub.s32 %v1126_v41, %v2906_v35  ;;  %vm1977_vm2 = vcmask 261312   ;;  %vm1984_vm3 = vcmask 326912   ;;  %vm1991_vm4 = vcmask 392512   ;;  %p2653_p2 = scmp.ne.s32.totalorder %s2363_s27, %s2652_s11  ;;  %s2762_s28 = smov [#allocation7]  }
  0x48   : > { %vm1998_vm5 = vcmask 458112   ;;  %vm2005_vm6 = vcmask 523712   ;;  %vm2012_vm7 = vcmask 589312   ;;  %vm2019_vm8 = vcmask 654912   ;;  %s2656_s12 = sshll.u32 %s2762_s28, 4  ;;  %s2657_s12 = int_to_ptr.vmem [resolvable:$false] %s2656_s12 }
  0x49   : > { %311 = vadd.xlane.f32.xlu1 %v290_v11  ;;  %vm3824_vm9 = vcmask 720512   ;;  %vm3820_vm10 = vcmask 786112   ;;  %vm3819_vm11 = vcmask 851712   ;;  %vm3813_vm12 = vcmask 917312   ;;  %p2654_p3 = pnand %p2653_p2, %p2855_p12  ;;  %s2658_s13 = scalar_lea.vmem %s2657_s12, 256 }
  0x4a   : > { %309 = vadd.xlane.f32.xlu0 %v289_v12  ;;  %vm3811_vm13 = vcmask 982912   ;;  %vm3807_vm14 = vcmask 1048512   ;;  %p2659_p7 = scmp.lt.s32.totalorder %s2363_s27, %s2657_s12  ;;  %p2660_p4 = scmp.lt.s32.totalorder %s2658_s13, %s2652_s11 }
  0x4b   : > { %p2655_p5 = pneg %p2654_p3 }
  0x4c   : > { %p2661_p8 = por %p2660_p4, %p2659_p7 }
  0x4d   : > { %315 = vadd.xlane.f32.xlu1 %v292_v15 }
  0x4e   : > { %313 = vadd.xlane.f32.xlu0 %v291_v16  ;;  %p2662_p9 = pnand %p2661_p8, %p2655_p5 }
  0x51   : > { %319 = vadd.xlane.f32.xlu1 %v294_v19 }
  0x52   : > { %317 = vadd.xlane.f32.xlu0 %v293_v20 }
  0x55   : > { %323 = vadd.xlane.f32.xlu1 %v296_v23 }
  0x56   : > { %321 = vadd.xlane.f32.xlu0 %v295_v24 }
  0x59   : > { %327 = vadd.xlane.f32.xlu1 %v298_v27 }
  0x5a   : > { %325 = vadd.xlane.f32.xlu0 %v297_v28 }
  0x5d   : > { %331 = vadd.xlane.f32.xlu1 %v300_v31 }
  0x5e   : > { %329 = vadd.xlane.f32.xlu0 %v299_v32 }
  0xca   : > { %v306_v42 = vpop.xlane.xlu1 %305 }
  0xcb   : > { %v302_v43 = vpop.xlane.xlu0 %301  ;;  %v2988_v28 = vadd.f32 %v2908_v38, %v306_v42 }
  0xcc   : > { %v2929_v48 = vadd.f32 %v2908_v38, %v302_v43 }
  0xcd   : > { %v675_v37 = vrot.slane %v2988_v28, %v2911_v39  ;;  %v679_v41 = vrot.slane %v2988_v28, %v2914_v40  ;;  %v683_v42 = vrot.slane %v2988_v28, %v2917_v44 }
  0xce   : > { %v611_v51 = vrot.slane %v2929_v48, %v2911_v39  ;;  %v615_v52 = vrot.slane %v2929_v48, %v2914_v40  ;;  %v619_v54 = vrot.slane %v2929_v48, %v2917_v44  ;;  %v623_v55 = vrot.slane %v2929_v48, %v2920_v45  ;;  %v308_v58 = vpop.xlane.xlu1 %307 }
  0xcf   : > { %v627_v56 = vrot.slane %v2929_v48, %v2923_v46  ;;  %v631_v57 = vrot.slane %v2929_v48, %v2926_v47  ;;  %v635_v59 = vrot.slane %v2929_v48, %v2932_v49  ;;  %v639_v60 = vrot.slane %v2929_v48, %v2935_v50  ;;  %v304_v0 = vpop.xlane.xlu0 %303 }
  0xd0   : > { %v1120_v61 = vcombine.low %v611_v51, %v615_v52  ;;  %v1121_v62 = vcombine.low %v619_v54, %v623_v55  ;;  %v2961_v6 = vadd.f32 %v2908_v38, %v304_v0  ;;  %v687_v52 = vrot.slane %v2988_v28, %v2920_v45 }
  0xd1   : > { %v1122_v63 = vcombine.low %v627_v56, %v631_v57  ;;  %v1123_v1 = vcombine.low %v635_v59, %v639_v60  ;;  %v691_v56 = vrot.slane %v2988_v28, %v2923_v46  ;;  %v695_v57 = vrot.slane %v2988_v28, %v2926_v47 }
  0xd2   : > { %v1130_v2 = vrot.slane %v1120_v61, %v2942_v53  ;;  %v1137_v3 = vrot.slane %v1121_v62, %v2942_v53  ;;  %v2963_v8 = vpop.xlane.xlu1 %311  ;;  %v643_v13 = vrot.slane %v2961_v6, %v2911_v39  ;;  %v647_v14 = vrot.slane %v2961_v6, %v2914_v40 }
  0xd3   : > { %v1144_v4 = vrot.slane %v1122_v63, %v2942_v53  ;;  %v1151_v5 = vrot.slane %v1123_v1, %v2942_v53  ;;  %v2967_v12 = vpop.xlane.xlu0 %309  ;;  %v651_v16 = vrot.slane %v2961_v6, %v2917_v44  ;;  %v655_v17 = vrot.slane %v2961_v6, %v2920_v45 }
  0xd4   : > { %v1152_v7 = vcombine.low %v1130_v2, %v1137_v3  ;;  %v659_v18 = vrot.slane %v2961_v6, %v2923_v46  ;;  %v663_v20 = vrot.slane %v2961_v6, %v2926_v47  ;;  %v667_v21 = vrot.slane %v2961_v6, %v2932_v49 }
  0xd5   : > { %v1153_v9 = vcombine.low %v1144_v4, %v1151_v5  ;;  %v671_v22 = vrot.slane %v2961_v6, %v2935_v50  ;;  %v1169_v23 = vcombine.low %v643_v13, %v647_v14  ;;  %v1170_v24 = vcombine.low %v651_v16, %v655_v17 }
  0xd6   : > { %v1160_v10 = vrot.slane %v1152_v7, %v2942_v53  ;;  %v2979_v19 = vpop.xlane.xlu1 %315  ;;  %v1171_v25 = vcombine.low %v659_v18, %v663_v20  ;;  %v699_v59 = vrot.slane %v2988_v28, %v2932_v49  ;;  %v703_v60 = vrot.slane %v2988_v28, %v2935_v50 }
  0xd7   : > { %v1167_v11 = vrot.slane %v1153_v9, %v2942_v53  ;;  %v314_v26 = vpop.xlane.xlu0 %313  ;;  %v1172_v27 = vcombine.low %v667_v21, %v671_v22  ;;  %v1179_v29 = vrot.slane %v1169_v23, %v2942_v53  ;;  %v1186_v30 = vrot.slane %v1170_v24, %v2942_v53 }
  0xd8   : > { %v1193_v31 = vrot.slane %v1171_v25, %v2942_v53  ;;  %v1218_v61 = vcombine.low %v675_v37, %v679_v41  ;;  %v1219_v63 = vcombine.low %v683_v42, %v687_v52  ;;  %v1220_v0 = vcombine.low %v691_v56, %v695_v57 }
  0xd9   : > { %v1168_v15 = vcombine.low %v1160_v10, %v1167_v11  ;;  %v1200_v32 = vrot.slane %v1172_v27, %v2942_v53  ;;  %v1201_v36 = vcombine.low %v1179_v29, %v1186_v30  ;;  %v3013_v1 = vadd.f32 %v2908_v38, %v308_v58 }
  0xda   : > { %v320_v33 = vpop.xlane.xlu1 %319  ;;  %v1221_v3 = vcombine.low %v699_v59, %v703_v60  ;;  %v1228_v4 = vrot.slane %v1218_v61, %v2942_v53  ;;  %v1235_v5 = vrot.slane %v1219_v63, %v2942_v53  ;;  %v1242_v7 = vrot.slane %v1220_v0, %v2942_v53 }
  0xdb   : > { %1905 = vperm.xlu0 %2560, %v1168_v15   ;;  %v1202_v43 = vcombine.low %v1193_v31, %v1200_v32  ;;  %v1209_v51 = vrot.slane %v1201_v36, %v2942_v53  ;;  %v318_v54 = vpop.xlane.xlu0 %317  ;;  %v707_v10 = vrot.slane %v3013_v1, %v2911_v39  ;;  %v711_v58 = vrot.slane %v3013_v1, %v2914_v40 }
  0xdc   : > { %v1249_v9 = vrot.slane %v1221_v3, %v2942_v53  ;;  %v1250_v13 = vcombine.low %v1228_v4, %v1235_v5  ;;  %v715_v14 = vrot.slane %v3013_v1, %v2917_v44  ;;  %v719_v16 = vrot.slane %v3013_v1, %v2920_v45 }
  0xdd   : > { %v1216_v55 = vrot.slane %v1202_v43, %v2942_v53  ;;  %v723_v17 = vrot.slane %v3013_v1, %v2923_v46  ;;  %v727_v20 = vrot.slane %v3013_v1, %v2926_v47  ;;  %v731_v21 = vrot.slane %v3013_v1, %v2932_v49 }
  0xde   : > { %v324_v2 = vpop.xlane.xlu1 %323  ;;  %v1251_v15 = vcombine.low %v1242_v7, %v1249_v9  ;;  %v1258_v18 = vrot.slane %v1250_v13, %v2942_v53  ;;  %v735_v24 = vrot.slane %v3013_v1, %v2935_v50  ;;  %v1267_v25 = vcombine.low %v707_v10, %v711_v58 }
  0xdf   : > { %v1217_v62 = vcombine.low %v1209_v51, %v1216_v55  ;;  %v322_v11 = vpop.xlane.xlu0 %321  ;;  %v3039_v27 = vadd.f32 %v2908_v38, %v2963_v8  ;;  %v1268_v29 = vcombine.low %v715_v14, %v719_v16  ;;  %v1269_v30 = vcombine.low %v723_v17, %v727_v20 }
  0xe0   : > { %v1265_v22 = vrot.slane %v1251_v15, %v2942_v53  ;;  %v3043_v31 = vadd.f32 %v2908_v38, %v2967_v12  ;;  %v1270_v36 = vcombine.low %v731_v21, %v735_v24  ;;  %v1277_v37 = vrot.slane %v1267_v25, %v2942_v53 }
  0xe1   : > { %1908 = vperm.xlu1 %2561, %v1217_v62   ;;  %v3048_v41 = vadd.f32 %v2908_v38, %v2979_v19  ;;  %v3051_v43 = vadd.f32 %v2908_v38, %v314_v26  ;;  %v1284_v8 = vrot.slane %v1268_v29, %v2942_v53  ;;  %v1291_v51 = vrot.slane %v1269_v30, %v2942_v53 }
  0xe2   : > { %v328_v23 = vpop.xlane.xlu1 %327  ;;  %v1266_v32 = vcombine.low %v1258_v18, %v1265_v22  ;;  %v3056_v52 = vadd.f32 %v2908_v38, %v320_v33  ;;  %v1298_v12 = vrot.slane %v1270_v36, %v2942_v53  ;;  %v739_v55 = vrot.slane %v3043_v31, %v2911_v39 }
  0xe3   : > { %v326_v42 = vpop.xlane.xlu0 %325  ;;  %v743_v19 = vrot.slane %v3043_v31, %v2914_v40  ;;  %v3064_v26 = vadd.f32 %v2908_v38, %v318_v54  ;;  %v1299_v56 = vcombine.low %v1277_v37, %v1284_v8  ;;  %v747_v57 = vrot.slane %v3043_v31, %v2917_v44 }
  0xe4   : > { %v751_v33 = vrot.slane %v3043_v31, %v2920_v45  ;;  %v3071_v59 = vadd.f32 %v2908_v38, %v324_v2  ;;  %v1300_v60 = vcombine.low %v1291_v51, %v1298_v12  ;;  %v755_v62 = vrot.slane %v3043_v31, %v2923_v46 }
  0xe5   : > { %1911 = vperm.xlu1 %2561, %v1266_v32   ;;  %v759_v63 = vrot.slane %v3043_v31, %v2926_v47  ;;  %v3078_v54 = vadd.f32 %v2908_v38, %v322_v11  ;;  %v1307_v0 = vrot.slane %v1299_v56, %v2942_v53  ;;  %v763_v3 = vrot.slane %v3043_v31, %v2932_v49 }
  0xe6   : > { %v332_v61 = vpop.xlane.xlu1 %331  ;;  %v767_v2 = vrot.slane %v3043_v31, %v2935_v50  ;;  %v3086_v4 = vadd.f32 %v2908_v38, %v328_v23  ;;  %v1314_v5 = vrot.slane %v1300_v60, %v2942_v53  ;;  %v1316_v7 = vcombine.low %v739_v55, %v743_v19 }
  0xe7   : > { %v1317_v9 = vcombine.low %v747_v57, %v751_v33  ;;  %v3090_v10 = vadd.f32 %v2908_v38, %v326_v42  ;;  %v3093_v11 = vadd.f32 %v2908_v38, %v332_v61  ;;  %v330_v13 = vpop.xlane.xlu0 %329  ;;  %v1318_v58 = vcombine.low %v755_v62, %v759_v63 }
  0xe8   : > { %v1319_v14 = vcombine.low %v763_v3, %v767_v2  ;;  %v1315_v15 = vcombine.low %v1307_v0, %v1314_v5  ;;  %v1326_v16 = vrot.slane %v1316_v7, %v2942_v53  ;;  %v899_v18 = vrot.slane %v3056_v52, %v2911_v39 }
  0xe9   : > { %v1333_v17 = vrot.slane %v1317_v9, %v2942_v53  ;;  %v1340_v20 = vrot.slane %v1318_v58, %v2942_v53  ;;  %v903_v22 = vrot.slane %v3056_v52, %v2914_v40  ;;  %v907_v23 = vrot.slane %v3056_v52, %v2917_v44 }
  0xea   : > { %v1347_v21 = vrot.slane %v1319_v14, %v2942_v53  ;;  %1914 = vperm.xlu1 %2561, %v1315_v15   ;;  %v3106_v24 = vadd.f32 %v2908_v38, %v330_v13  ;;  %v911_v29 = vrot.slane %v3056_v52, %v2920_v45  ;;  %v915_v30 = vrot.slane %v3056_v52, %v2923_v46 }
  0xeb   : > { %v1348_v25 = vcombine.low %v1326_v16, %v1333_v17  ;;  %v919_v36 = vrot.slane %v3056_v52, %v2926_v47  ;;  %v923_v37 = vrot.slane %v3056_v52, %v2932_v49  ;;  %v927_v42 = vrot.slane %v3056_v52, %v2935_v50 }
  0xec   : > { %v1349_v32 = vcombine.low %v1340_v20, %v1347_v21  ;;  %v1561_v8 = vcombine.low %v899_v18, %v903_v22  ;;  %v1562_v51 = vcombine.low %v907_v23, %v911_v29  ;;  %v771_v12 = vrot.slane %v3039_v27, %v2911_v39 }
  0xed   : > { %v1356_v38 = vrot.slane %v1348_v25, %v2942_v53  ;;  %v1563_v19 = vcombine.low %v915_v30, %v919_v36  ;;  %v1564_v56 = vcombine.low %v923_v37, %v927_v42  ;;  %v775_v57 = vrot.slane %v3039_v27, %v2914_v40 }
  0xee   : > { %v1363_v55 = vrot.slane %v1349_v32, %v2942_v53  ;;  %v1571_v33 = vrot.slane %v1561_v8, %v2942_v53  ;;  %v1578_v60 = vrot.slane %v1562_v51, %v2942_v53  ;;  %v779_v61 = vrot.slane %v3039_v27, %v2917_v44 }
  0xef   : > { %v783_v62 = vrot.slane %v3039_v27, %v2920_v45  ;;  %v1585_v0 = vrot.slane %v1563_v19, %v2942_v53  ;;  %v1592_v3 = vrot.slane %v1564_v56, %v2942_v53  ;;  %v787_v2 = vrot.slane %v3039_v27, %v2923_v46 }
  0xf0   : > { %v1364_v63 = vcombine.low %v1356_v38, %v1363_v55  ;;  %v1593_v5 = vcombine.low %v1571_v33, %v1578_v60  ;;  %v791_v7 = vrot.slane %v3039_v27, %v2926_v47  ;;  %v795_v9 = vrot.slane %v3039_v27, %v2932_v49 }
  0xf1   : > { %v799_v13 = vrot.slane %v3039_v27, %v2935_v50  ;;  %v1594_v58 = vcombine.low %v1585_v0, %v1592_v3  ;;  %v1365_v14 = vcombine.low %v771_v12, %v775_v57  ;;  %v1366_v15 = vcombine.low %v779_v61, %v783_v62 }
  0xf2   : > { %1917 = vperm.xlu1 %2561, %v1364_v63   ;;  %v963_v16 = vrot.slane %v3071_v59, %v2911_v39  ;;  %v1601_v17 = vrot.slane %v1593_v5, %v2942_v53  ;;  %v1367_v18 = vcombine.low %v787_v2, %v791_v7  ;;  %v967_v21 = vrot.slane %v3071_v59, %v2914_v40 }
  0xf3   : > { %v1368_v20 = vcombine.low %v795_v9, %v799_v13  ;;  %v1608_v22 = vrot.slane %v1594_v58, %v2942_v53  ;;  %v1375_v23 = vrot.slane %v1365_v14, %v2942_v53  ;;  %v1382_v25 = vrot.slane %v1366_v15, %v2942_v53 }
  0xf4   : > { %v971_v29 = vrot.slane %v3071_v59, %v2917_v44  ;;  %v1389_v30 = vrot.slane %v1367_v18, %v2942_v53  ;;  %v975_v36 = vrot.slane %v3071_v59, %v2920_v45  ;;  %v979_v37 = vrot.slane %v3071_v59, %v2923_v46 }
  0xf5   : > { %v1396_v32 = vrot.slane %v1368_v20, %v2942_v53  ;;  %v1609_v42 = vcombine.low %v1601_v17, %v1608_v22  ;;  %v1397_v38 = vcombine.low %v1375_v23, %v1382_v25  ;;  %v983_v8 = vrot.slane %v3071_v59, %v2926_v47 }
  0xf6   : > { %v987_v51 = vrot.slane %v3071_v59, %v2932_v49  ;;  %v991_v55 = vrot.slane %v3071_v59, %v2935_v50  ;;  %v1659_v19 = vcombine.low %v963_v16, %v967_v21  ;;  %v1660_v56 = vcombine.low %v971_v29, %v975_v36 }
  0xf7   : > { %v1398_v12 = vcombine.low %v1389_v30, %v1396_v32  ;;  %1932 = vperm.xlu0 %2560, %v1609_v42   ;;  %v1405_v57 = vrot.slane %v1397_v38, %v2942_v53  ;;  %v1661_v33 = vcombine.low %v979_v37, %v983_v8  ;;  %v803_v60 = vrot.slane %v3051_v43, %v2911_v39 }
  0xf8   : > { %v807_v61 = vrot.slane %v3051_v43, %v2914_v40  ;;  %v1662_v63 = vcombine.low %v987_v51, %v991_v55  ;;  %v1669_v0 = vrot.slane %v1659_v19, %v2942_v53  ;;  %v1676_v3 = vrot.slane %v1660_v56, %v2942_v53 }
  0xf9   : > { %v1412_v62 = vrot.slane %v1398_v12, %v2942_v53  ;;  %v1683_v2 = vrot.slane %v1661_v33, %v2942_v53  ;;  %v811_v5 = vrot.slane %v3051_v43, %v2917_v44  ;;  %v815_v7 = vrot.slane %v3051_v43, %v2920_v45 }
  0xfa   : > { %v819_v9 = vrot.slane %v3051_v43, %v2923_v46  ;;  %v1690_v58 = vrot.slane %v1662_v63, %v2942_v53  ;;  %v1691_v14 = vcombine.low %v1669_v0, %v1676_v3  ;;  %v823_v15 = vrot.slane %v3051_v43, %v2926_v47 }
  0xfb   : > { %v1413_v13 = vcombine.low %v1405_v57, %v1412_v62  ;;  %v827_v16 = vrot.slane %v3051_v43, %v2932_v49  ;;  %v831_v17 = vrot.slane %v3051_v43, %v2935_v50  ;;  %v1414_v18 = vcombine.low %v803_v60, %v807_v61 }
  0xfc   : > { %v1415_v20 = vcombine.low %v811_v5, %v815_v7  ;;  %v1692_v21 = vcombine.low %v1683_v2, %v1690_v58  ;;  %v1699_v22 = vrot.slane %v1691_v14, %v2942_v53  ;;  %v1416_v23 = vcombine.low %v819_v9, %v823_v15 }
  0xfd   : > { %1920 = vperm.xlu1 %2561, %v1413_v13   ;;  %v1027_v25 = vrot.slane %v3086_v4, %v2911_v39  ;;  %v1417_v29 = vcombine.low %v827_v16, %v831_v17  ;;  %v1424_v30 = vrot.slane %v1414_v18, %v2942_v53  ;;  %v1031_v36 = vrot.slane %v3086_v4, %v2914_v40 }
  0xfe   : > { %v1431_v32 = vrot.slane %v1415_v20, %v2942_v53  ;;  %v1706_v37 = vrot.slane %v1692_v21, %v2942_v53  ;;  %v1438_v42 = vrot.slane %v1416_v23, %v2942_v53  ;;  %v1035_v38 = vrot.slane %v3086_v4, %v2917_v44 }
  0xff   : > { %v1039_v8 = vrot.slane %v3086_v4, %v2920_v45  ;;  %v1445_v51 = vrot.slane %v1417_v29, %v2942_v53  ;;  %v1043_v55 = vrot.slane %v3086_v4, %v2923_v46  ;;  %v1047_v19 = vrot.slane %v3086_v4, %v2926_v47 }
 0x100   : > { %v1446_v12 = vcombine.low %v1424_v30, %v1431_v32  ;;  %v1707_v56 = vcombine.low %v1699_v22, %v1706_v37  ;;  %v1051_v57 = vrot.slane %v3086_v4, %v2932_v49  ;;  %v1055_v33 = vrot.slane %v3086_v4, %v2935_v50 }
 0x101   : > { %v1757_v60 = vcombine.low %v1027_v25, %v1031_v36  ;;  %v1447_v61 = vcombine.low %v1438_v42, %v1445_v51  ;;  %v1758_v63 = vcombine.low %v1035_v38, %v1039_v8  ;;  %v1759_v0 = vcombine.low %v1043_v55, %v1047_v19 }
 0x102   : > { %v1454_v62 = vrot.slane %v1446_v12, %v2942_v53  ;;  %1938 = vperm.xlu0 %2560, %v1707_v56   ;;  %v1760_v3 = vcombine.low %v1051_v57, %v1055_v33  ;;  %v835_v5 = vrot.slane %v3048_v41, %v2911_v39  ;;  %v839_v7 = vrot.slane %v3048_v41, %v2914_v40 }
 0x103   : > { %v1767_v2 = vrot.slane %v1757_v60, %v2942_v53  ;;  %v1461_v9 = vrot.slane %v1447_v61, %v2942_v53  ;;  %v1774_v13 = vrot.slane %v1758_v63, %v2942_v53  ;;  %v1781_v58 = vrot.slane %v1759_v0, %v2942_v53 }
 0x104   : > { %v843_v14 = vrot.slane %v3048_v41, %v2917_v44  ;;  %v1788_v15 = vrot.slane %v1760_v3, %v2942_v53  ;;  %v847_v16 = vrot.slane %v3048_v41, %v2920_v45  ;;  %v851_v17 = vrot.slane %v3048_v41, %v2923_v46 }
 0x105   : > { %v855_v18 = vrot.slane %v3048_v41, %v2926_v47  ;;  %v1462_v20 = vcombine.low %v1454_v62, %v1461_v9  ;;  %v1789_v21 = vcombine.low %v1767_v2, %v1774_v13  ;;  %v859_v22 = vrot.slane %v3048_v41, %v2932_v49 }
 0x106   : > { %v863_v23 = vrot.slane %v3048_v41, %v2935_v50  ;;  %v1790_v25 = vcombine.low %v1781_v58, %v1788_v15  ;;  %v1463_v29 = vcombine.low %v835_v5, %v839_v7  ;;  %v1464_v30 = vcombine.low %v843_v14, %v847_v16 }
 0x107   : > { %v1465_v32 = vcombine.low %v851_v17, %v855_v18  ;;  %1923 = vperm.xlu1 %2561, %v1462_v20   ;;  %v1797_v36 = vrot.slane %v1789_v21, %v2942_v53  ;;  %v1091_v42 = vrot.slane %v3093_v11, %v2911_v39  ;;  %v1095_v38 = vrot.slane %v3093_v11, %v2914_v40 }
 0x108   : > { %v1466_v37 = vcombine.low %v859_v22, %v863_v23  ;;  %v1804_v8 = vrot.slane %v1790_v25, %v2942_v53  ;;  %v1473_v51 = vrot.slane %v1463_v29, %v2942_v53  ;;  %v1480_v12 = vrot.slane %v1464_v30, %v2942_v53 }
 0x109   : > { %v1487_v55 = vrot.slane %v1465_v32, %v2942_v53  ;;  %v1099_v56 = vrot.slane %v3093_v11, %v2917_v44  ;;  %v1103_v57 = vrot.slane %v3093_v11, %v2920_v45  ;;  %v1107_v33 = vrot.slane %v3093_v11, %v2923_v46 }
 0x10a   : > { %v1494_v19 = vrot.slane %v1466_v37, %v2942_v53  ;;  %v1805_v60 = vcombine.low %v1797_v36, %v1804_v8  ;;  %v1495_v61 = vcombine.low %v1473_v51, %v1480_v12  ;;  %v1111_v62 = vrot.slane %v3093_v11, %v2926_v47 }
 0x10b   : > { %v1115_v63 = vrot.slane %v3093_v11, %v2932_v49  ;;  %v1119_v3 = vrot.slane %v3093_v11, %v2935_v50  ;;  %v1855_v2 = vcombine.low %v1091_v42, %v1095_v38  ;;  %v1856_v5 = vcombine.low %v1099_v56, %v1103_v57 }
 0x10c   : > { %v1496_v0 = vcombine.low %v1487_v55, %v1494_v19  ;;  %1944 = vperm.xlu0 %2560, %v1805_v60   ;;  %v1503_v7 = vrot.slane %v1495_v61, %v2942_v53  ;;  %v1857_v9 = vcombine.low %v1107_v33, %v1111_v62  ;;  %v867_v13 = vrot.slane %v3064_v26, %v2911_v39 }
 0x10d   : > { %v871_v58 = vrot.slane %v3064_v26, %v2914_v40  ;;  %v1858_v15 = vcombine.low %v1115_v63, %v1119_v3  ;;  %v1865_v16 = vrot.slane %v1855_v2, %v2942_v53  ;;  %v1872_v17 = vrot.slane %v1856_v5, %v2942_v53 }
 0x10e   : > { %v1510_v14 = vrot.slane %v1496_v0, %v2942_v53  ;;  %v1879_v18 = vrot.slane %v1857_v9, %v2942_v53  ;;  %v875_v20 = vrot.slane %v3064_v26, %v2917_v44  ;;  %v879_v21 = vrot.slane %v3064_v26, %v2920_v45 }
 0x10f   : > { %v883_v22 = vrot.slane %v3064_v26, %v2923_v46  ;;  %v1886_v25 = vrot.slane %v1858_v15, %v2942_v53  ;;  %v1887_v29 = vcombine.low %v1865_v16, %v1872_v17  ;;  %v887_v30 = vrot.slane %v3064_v26, %v2926_v47 }
 0x110   : > { %v1511_v23 = vcombine.low %v1503_v7, %v1510_v14  ;;  %v891_v32 = vrot.slane %v3064_v26, %v2932_v49  ;;  %v895_v36 = vrot.slane %v3064_v26, %v2935_v50  ;;  %v1512_v37 = vcombine.low %v867_v13, %v871_v58 }
 0x111   : > { %v1513_v42 = vcombine.low %v875_v20, %v879_v21  ;;  %v1888_v38 = vcombine.low %v1879_v18, %v1886_v25  ;;  %v1895_v8 = vrot.slane %v1887_v29, %v2942_v53  ;;  %v1514_v51 = vcombine.low %v883_v22, %v887_v30 }
 0x112   : > { %1926 = vperm.xlu1 %2561, %v1511_v23   ;;  %v931_v12 = vrot.slane %v3078_v54, %v2911_v39  ;;  %v1515_v55 = vcombine.low %v891_v32, %v895_v36  ;;  %v1522_v19 = vrot.slane %v1512_v37, %v2942_v53  ;;  %v935_v57 = vrot.slane %v3078_v54, %v2914_v40 }
 0x113   : > { %v1529_v56 = vrot.slane %v1513_v42, %v2942_v53  ;;  %v1902_v33 = vrot.slane %v1888_v38, %v2942_v53  ;;  %v1536_v60 = vrot.slane %v1514_v51, %v2942_v53  ;;  %v939_v61 = vrot.slane %v3078_v54, %v2917_v44 }
 0x114   : > { %v943_v62 = vrot.slane %v3078_v54, %v2920_v45  ;;  %v1543_v63 = vrot.slane %v1515_v55, %v2942_v53  ;;  %v947_v3 = vrot.slane %v3078_v54, %v2923_v46  ;;  %v951_v2 = vrot.slane %v3078_v54, %v2926_v47 }
 0x115   : > { %v1544_v0 = vcombine.low %v1522_v19, %v1529_v56  ;;  %v1903_v5 = vcombine.low %v1895_v8, %v1902_v33  ;;  %v955_v7 = vrot.slane %v3078_v54, %v2932_v49  ;;  %v959_v9 = vrot.slane %v3078_v54, %v2935_v50 }
 0x116   : > { %v1610_v13 = vcombine.low %v931_v12, %v935_v57  ;;  %v1545_v58 = vcombine.low %v1536_v60, %v1543_v63  ;;  %v1611_v15 = vcombine.low %v939_v61, %v943_v62  ;;  %v1612_v16 = vcombine.low %v947_v3, %v951_v2 }
 0x117   : > { %v1552_v14 = vrot.slane %v1544_v0, %v2942_v53  ;;  %1950 = vperm.xlu0 %2560, %v1903_v5   ;;  %v1613_v17 = vcombine.low %v955_v7, %v959_v9  ;;  %v995_v20 = vrot.slane %v3090_v10, %v2911_v39  ;;  %v999_v21 = vrot.slane %v3090_v10, %v2914_v40 }
 0x118   : > { %v1620_v18 = vrot.slane %v1610_v13, %v2942_v53  ;;  %v1559_v22 = vrot.slane %v1545_v58, %v2942_v53  ;;  %v1627_v23 = vrot.slane %v1611_v15, %v2942_v53  ;;  %v1634_v25 = vrot.slane %v1612_v16, %v2942_v53 }
 0x119   : > { %v1003_v29 = vrot.slane %v3090_v10, %v2917_v44  ;;  %v1641_v30 = vrot.slane %v1613_v17, %v2942_v53  ;;  %v1007_v32 = vrot.slane %v3090_v10, %v2920_v45  ;;  %v1011_v36 = vrot.slane %v3090_v10, %v2923_v46 }
 0x11a   : > { %v1015_v37 = vrot.slane %v3090_v10, %v2926_v47  ;;  %v1560_v42 = vcombine.low %v1552_v14, %v1559_v22  ;;  %v1642_v38 = vcombine.low %v1620_v18, %v1627_v23  ;;  %v1019_v8 = vrot.slane %v3090_v10, %v2932_v49 }
 0x11b   : > { %v1023_v51 = vrot.slane %v3090_v10, %v2935_v50  ;;  %v1643_v12 = vcombine.low %v1634_v25, %v1641_v30  ;;  %v1708_v55 = vcombine.low %v995_v20, %v999_v21  ;;  %v1709_v19 = vcombine.low %v1003_v29, %v1007_v32 }
 0x11c   : > { %v1710_v56 = vcombine.low %v1011_v36, %v1015_v37  ;;  %1929 = vperm.xlu1 %2561, %v1560_v42   ;;  %v1650_v57 = vrot.slane %v1642_v38, %v2942_v53  ;;  %v1059_v60 = vrot.slane %v3106_v24, %v2911_v39  ;;  %v1063_v61 = vrot.slane %v3106_v24, %v2914_v40 }
 0x11d   : > { %v1711_v33 = vcombine.low %v1019_v8, %v1023_v51  ;;  %v1657_v62 = vrot.slane %v1643_v12, %v2942_v53  ;;  %v1718_v63 = vrot.slane %v1708_v55, %v2942_v53  ;;  %v1725_v0 = vrot.slane %v1709_v19, %v2942_v53 }
 0x11e   : > { %v1732_v3 = vrot.slane %v1710_v56, %v2942_v53  ;;  %v1067_v5 = vrot.slane %v3106_v24, %v2917_v44  ;;  %v1071_v7 = vrot.slane %v3106_v24, %v2920_v45  ;;  %v1075_v9 = vrot.slane %v3106_v24, %v2923_v46 }
 0x11f   : > { %v1739_v2 = vrot.slane %v1711_v33, %v2942_v53  ;;  %v1658_v40 = vcombine.low %v1650_v57, %v1657_v62  ;;  %v1740_v13 = vcombine.low %v1718_v63, %v1725_v0  ;;  %v1079_v58 = vrot.slane %v3106_v24, %v2926_v47 }
 0x120   : > { %v1083_v14 = vrot.slane %v3106_v24, %v2932_v49  ;;  %v1087_v16 = vrot.slane %v3106_v24, %v2935_v50  ;;  %v1806_v17 = vcombine.low %v1059_v60, %v1063_v61  ;;  %v1807_v44 = vcombine.low %v1067_v5, %v1071_v7 }
 0x121   : > { %v1741_v15 = vcombine.low %v1732_v3, %v1739_v2  ;;  %1935 = vperm.xlu1 %2561, %v1658_v40   ;;  %v1748_v45 = vrot.slane %v1740_v13, %v2942_v53  ;;  %v1808_v18 = vcombine.low %v1075_v9, %v1079_v58  ;;  %v3347_v51 = vand.u32 127, %v608_v34 }
 0x122   : > { %v1809_v20 = vcombine.low %v1083_v14, %v1087_v16  ;;  %v1816_v21 = vrot.slane %v1806_v17, %v2942_v53  ;;  %v1823_v47 = vrot.slane %v1807_v44, %v2942_v53 }
 0x123   : > { %v1755_v46 = vrot.slane %v1741_v15, %v2942_v53  ;;  %v1830_v22 = vrot.slane %v1808_v18, %v2942_v53  ;;  %3832 = vst [vmem:[#allocation11_spill] sm:$0xff] %v3347_v51  ;;  %v1958_v12 = vadd.s32 4294967288, %v3347_v51  ;;  %v1965_v19 = vadd.s32 4294967280, %v3347_v51 }
 0x124   : > { %v1837_v23 = vrot.slane %v1809_v20, %v2942_v53  ;;  %v1838_v25 = vcombine.low %v1816_v21, %v1823_v47  ;;  %v1972_v56 = vadd.s32 4294967272, %v3347_v51  ;;  %v1979_v57 = vadd.s32 4294967264, %v3347_v51 }
 0x125   : > { %v1756_v49 = vcombine.low %v1748_v45, %v1755_v46  ;;  %v3354_v33 = vsub.s32 %v1958_v12, %v2906_v35  ;;  %v1986_v60 = vadd.s32 4294967256, %v3347_v51  ;;  %v3358_v62 = vsub.s32 %v1965_v19, %v2906_v35 }
 0x126   : > { %v1839_v50 = vcombine.low %v1830_v22, %v1837_v23  ;;  %v1846_v29 = vrot.slane %v1838_v25, %v2942_v53  ;;  %v1993_v34 = vadd.s32 4294967248, %v3347_v51  ;;  %v3363_v63 = vsub.s32 %v3347_v51, %v2906_v35 }
 0x127   : > { %1941 = vperm.xlu1 %2561, %v1756_v49   ;;  %v3366_v0 = vsub.s32 %v1972_v56, %v2906_v35  ;;  %v2000_v3 = vadd.s32 4294967240, %v3347_v51  ;;  %v3370_v5 = vsub.s32 %v1979_v57, %v2906_v35  ;;  %v2007_v7 = vadd.s32 4294967232, %v3347_v51 }
 0x128   : > { %v1853_v30 = vrot.slane %v1839_v50, %v2942_v53  ;;  %v3375_v40 = vsub.s32 %v1986_v60, %v2906_v35  ;;  %v3379_v14 = vsub.s32 %v1993_v34, %v2906_v35  ;;  %v2021_v18 = vadd.s32 4294967216, %v3347_v51 }
 0x129   : > { %v3384_v17 = vsub.s32 %v2000_v3, %v2906_v35  ;;  %v3388_v45 = vsub.s32 %v2007_v7, %v2906_v35  ;;  %v2014_v20 = vadd.s32 4294967224, %v3347_v51  ;;  %v2042_v34 = vadd.s32 4294967192, %v3347_v51 }
 0x12a   : > { %v1854_v32 = vcombine.low %v1846_v29, %v1853_v30  ;;  %3833 = vst [vmem:[#allocation12_spill] sm:$0xff] %v3375_v40  ;;  %3834 = vst [vmem:[#allocation13_spill] sm:$0xff] %v3379_v14  ;;  %v2056_v7 = vadd.s32 4294967176, %v3347_v51 }
 0x12b   : > { %3835 = vst [vmem:[#allocation14_spill] sm:$0xff] %v3384_v17  ;;  %3836 = vst [vmem:[#allocation15_spill] sm:$0xff] %v3388_v45 }
 0x12c   : > { %1947 = vperm.xlu1 %2561, %v1854_v32   ;;  %v3401_v32 = vsub.s32 %v2021_v18, %v2906_v35 }
 0x12e   : > { %3837 = vst [vmem:[#allocation16_spill] sm:$0xff] %v3401_v32 }
 0x156   : > { %v1906_v61 = vpop.permute.xlu0 %1905 }
 0x157   : > { %v1957_v15 = vrot.slane %v1906_v61, %v3363_v63 }
 0x15c   : > { %v1909_v36 = vpop.permute.xlu1 %1908 }
 0x15d   : > { %v1962_v9 = vrot.slane %v1909_v36, %v3354_v33  ;;  %v2035_v36 = vadd.s32 4294967200, %v3347_v51 }
 0x15f   : > { %v1964_v46 = vsel %vm1963_vm0, %v1962_v9, %v1957_v15  ;;  %v3414_v57 = vsub.s32 %v2035_v36, %v2906_v35 }
 0x160   : > { %v1912_v37 = vpop.permute.xlu1 %1911 }
 0x161   : > { %v1969_v13 = vrot.slane %v1912_v37, %v3358_v62  ;;  %v3405_v37 = vsub.s32 %v2014_v20, %v2906_v35  ;;  %3839 = vst [vmem:[#allocation18_spill] sm:$0xff] %v3414_v57 }
 0x163   : > { %v1971_v22 = vsel %vm1970_vm1, %v1969_v13, %v1964_v46  ;;  %3838 = vst [vmem:[#allocation17_spill] sm:$0xff] %v3405_v37  ;;  %v3438_v46 = vsub.s32 %v2056_v7, %v2906_v35  ;;  %v372_v7 = vand.u32 2147483647, %v3039_v27 }
 0x165   : > { %v1915_v42 = vpop.permute.xlu1 %1914  ;;  %3843 = vst [vmem:[#allocation22_spill] sm:$0xff] %v3438_v46 }
 0x166   : > { %v1976_v16 = vrot.slane %v1915_v42, %v3366_v0 }
 0x168   : > { %v1978_v23 = vsel %vm1977_vm2, %v1976_v16, %v1971_v22 }
 0x16d   : > { %v1918_v38 = vpop.permute.xlu1 %1917 }
 0x16e   : > { %v1983_v44 = vrot.slane %v1918_v38, %v3370_v5  ;;  %v2028_v38 = vadd.s32 4294967208, %v3347_v51 }
 0x170   : > { %v1985_v50 = vsel %vm1984_vm3, %v1983_v44, %v1978_v23  ;;  %v3419_v61 = vsub.s32 %v2028_v38, %v2906_v35  ;;  %v3432_v44 = vsub.s32 %v2042_v34, %v2906_v35 }
 0x172   : > { %v1933_v58 = vpop.permute.xlu0 %1932  ;;  %3840 = vst [vmem:[#allocation19_spill] sm:$0xff] %v3419_v61  ;;  %3841 = vst [vmem:[#allocation20_spill] sm:$0xff] %v3432_v44 }
 0x173   : > { %v2018_v60 = vrot.slane %v1933_v58, %v3405_v37 }
 0x178   : > { %v1921_v8 = vpop.permute.xlu1 %1920 }
 0x179   : > { %v1990_v21 = vrot.slane %v1921_v8, %v3375_v40 }
 0x17b   : > { %v1992_v42 = vsel %vm1991_vm4, %v1990_v21, %v1985_v50 }
 0x17d   : > { %v1939_v29 = vpop.permute.xlu0 %1938 }
 0x17e   : > { %v2032_v16 = vrot.slane %v1939_v29, %v3419_v61 }
 0x182   : > { %v1924_v55 = vpop.permute.xlu1 %1923 }
 0x183   : > { %v1997_v49 = vrot.slane %v1924_v55, %v3379_v14 }
 0x185   : > { %v1999_v8 = vsel %vm1998_vm5, %v1997_v49, %v1992_v42  ;;  %v591_v42 = vld [vmem:[%s253_s15] sm:$0x1] }
 0x187   : > { %v1945_v3 = vpop.permute.xlu0 %1944 }
 0x188   : > { %v2046_v22 = vrot.slane %v1945_v3, %v3432_v44 }
 0x18d   : > { %v1927_v2 = vpop.permute.xlu1 %1926 }
 0x18e   : > { %v2004_v25 = vrot.slane %v1927_v2, %v3384_v17  ;;  %v2049_v2 = vadd.s32 4294967184, %v3347_v51 }
 0x190   : > { %v2006_v55 = vsel %vm2005_vm6, %v2004_v25, %v1999_v8  ;;  %v3435_v18 = vsub.s32 %v2049_v2, %v2906_v35 }
 0x192   : > { %3842 = vst [vmem:[#allocation21_spill] sm:$0xff] %v3435_v18  ;;  %v1951_v21 = vpop.permute.xlu0 %1950 }
 0x193   : > { %v2060_v25 = vrot.slane %v1951_v21, %v3438_v46 }
 0x197   : > { %v1930_v47 = vpop.permute.xlu1 %1929 }
 0x198   : > { %v2011_v30 = vrot.slane %v1930_v47, %v3388_v45 }
 0x19a   : > { %v2013_v19 = vsel %vm2012_vm7, %v2011_v30, %v2006_v55 }
 0x19b   : > { %v2020_v9 = vsel %vm2019_vm8, %v2018_v60, %v2013_v19  ;;  %v369_v60 = vand.u32 2147483647, %v2988_v28 }
 0x19c   : > { %v1936_v12 = vpop.permute.xlu1 %1935 }
 0x19d   : > { %v2025_v56 = vrot.slane %v1936_v12, %v3401_v32 }
 0x19f   : > { %v2027_v15 = vsel %vm3824_vm9, %v2025_v56, %v2020_v9  ;;  %v370_v56 = vand.u32 2147483647, %v3013_v1  ;;  %v385_v9 = vsub.f32 0.0, %v369_v60 }
 0x1a0   : > { %v2034_v20 = vsel %vm3820_vm10, %v2032_v16, %v2027_v15  ;;  %v374_v15 = vand.u32 2147483647, %v3048_v41  ;;  %v388_v16 = vsub.f32 0.0, %v372_v7 }
 0x1a1   : > { %v386_v2 = vsub.f32 0.0, %v370_v56  ;;  %v403_v21 = vmul.f32 1.442695, %v385_v9  ;;  %v382_v9 = vand.u32 2147483647, %v3093_v11 }
 0x1a2   : > { %v1942_v13 = vpop.permute.xlu1 %1941 }
 0x1a3   : > { %v2039_v58 = vrot.slane %v1942_v13, %v3414_v57  ;;  %v371_v13 = vand.u32 2147483647, %v3043_v31 }
 0x1a5   : > { %v2041_v47 = vsel %vm3819_vm11, %v2039_v58, %v2034_v20  ;;  %v405_v58 = vmul.f32 1.442695, %v386_v2  ;;  %v373_v20 = vand.u32 2147483647, %v3051_v43 }
 0x1a6   : > { %v2048_v50 = vsel %vm3813_vm12, %v2046_v22, %v2041_v47  ;;  %v387_v47 = vsub.f32 0.0, %v371_v13  ;;  %v390_v22 = vsub.f32 0.0, %v374_v15  ;;  %v381_v15 = vand.u32 2147483647, %v3106_v24 }
 0x1a7   : > { %v1948_v49 = vpop.permute.xlu1 %1947 }
 0x1a8   : > { %v2053_v23 = vrot.slane %v1948_v49, %v3435_v18  ;;  %v409_v49 = vmul.f32 1.442695, %v388_v16 }
 0x1aa   : > { %v2055_v29 = vsel %vm3811_vm13, %v2053_v23, %v2048_v50  ;;  %v389_v23 = vsub.f32 0.0, %v373_v20  ;;  %v407_v50 = vmul.f32 1.442695, %v387_v47 }
 0x1ab   : > { %v2062_v30 = vsel %vm3807_vm14, %v2060_v25, %v2055_v29  ;;  %v376_v25 = vand.u32 2147483647, %v3056_v52  ;;  %v375_v29 = vand.u32 2147483647, %v3064_v26 }
 0x1ac   : > { %v2069_v36 = vrot.slane %v2062_v30, %v2942_v53  ;;  %v378_v30 = vand.u32 2147483647, %v3071_v59 }
 0x1ae   : > { %v2076_v38 = vrot.slane %v2069_v36, %v2942_v53  ;;  %v368_v53 = vand.u32 2147483647, %v2961_v6  ;;  %v413_v36 = vmul.f32 1.442695, %v390_v22 }
 0x1b0   : > { %v2078_v8 = vmul.f32 %v2076_v38, %v591_v42  ;;  %v384_v55 = vsub.f32 0.0, %v368_v53  ;;  %v411_v42 = vmul.f32 1.442695, %v389_v23  ;;  %v392_v38 = vsub.f32 0.0, %v376_v25 }
 0x1b1   : > { %v394_v53 = vsub.f32 0.0, %v378_v30  ;;  %v397_v25 = vsub.f32 0.0, %v381_v15 }
 0x1b2   : > { %v2083_v12 = vrot.slane %v2078_v8, %v2911_v39  ;;  %v367_v39 = vand.u32 2147483647, %v2929_v48  ;;  %v401_v34 = vmul.f32 1.442695, %v384_v55  ;;  %v391_v8 = vsub.f32 0.0, %v375_v29 }
 0x1b3   : > { %v379_v55 = vand.u32 2147483647, %v3090_v10  ;;  %v417_v56 = vmul.f32 1.442695, %v392_v38  ;;  %v421_v2 = vmul.f32 1.442695, %v394_v53 }
 0x1b4   : > { %2089 = vbcast.lane.b32.xlu0 %v2083_v12, 264  ;;  %2085 = vbcast.lane.b32.xlu1 %v2083_v12, 256  ;;  %v383_v19 = vsub.f32 0.0, %v367_v39  ;;  %2562 = vpow2.f32 %v401_v34  ;;  %v380_v39 = vand.u32 2147483647, %v3086_v4 }
 0x1b5   : > { %v415_v34 = vmul.f32 1.442695, %v391_v8  ;;  %v395_v13 = vsub.f32 0.0, %v379_v55  ;;  %v427_v8 = vmul.f32 1.442695, %v397_v25 }
 0x1b6   : > { %v399_v3 = vmul.f32 1.442695, %v383_v19  ;;  %v396_v7 = vsub.f32 0.0, %v380_v39 }
 0x1b7   : > { %v423_v23 = vmul.f32 1.442695, %v395_v13 }
 0x1b8   : > { %2097 = vbcast.lane.b32.xlu0 %v2083_v12, 280  ;;  %2093 = vbcast.lane.b32.xlu1 %v2083_v12, 272  ;;  %2564 = vpow2.f32 %v399_v3  ;;  %v425_v22 = vmul.f32 1.442695, %v396_v7 }
 0x1b9   : > { %2566 = vpow2.f32 %v405_v58 }
 0x1ba   : > { %2568 = vpow2.f32 %v403_v21 }
 0x1bb   : > { %2570 = vpow2.f32 %v409_v49  ;;  %v398_v49 = vsub.f32 0.0, %v382_v9 }
 0x1bc   : > { %2105 = vbcast.lane.b32.xlu0 %v2083_v12, 296  ;;  %2101 = vbcast.lane.b32.xlu1 %v2083_v12, 288  ;;  %2572 = vpow2.f32 %v407_v50 }
 0x1bd   : > { %2574 = vpow2.f32 %v413_v36 }
 0x1be   : > { %2576 = vpow2.f32 %v411_v42  ;;  %v429_v42 = vmul.f32 1.442695, %v398_v49 }
 0x1bf   : > { %2578 = vpow2.f32 %v417_v56 }
 0x1c0   : > { %2113 = vbcast.lane.b32.xlu0 %v2083_v12, 312  ;;  %2109 = vbcast.lane.b32.xlu1 %v2083_v12, 304  ;;  %2580 = vpow2.f32 %v415_v34 }
 0x1c1   : > { %v2563_v19 = vpop.eup %2562  ;;  %2582 = vpow2.f32 %v421_v2 }
 0x1c2   : > { %v440_v58 = vadd.f32 1.0, %v2563_v19  ;;  %v443_v38 = vmul.f32 -0.5, %v2563_v19  ;;  %v446_v2 = vand.u32 2147483647, %v2563_v19 }
 0x1c4   : > { %2121 = vbcast.lane.b32.xlu0 %v2083_v12, 328  ;;  %2117 = vbcast.lane.b32.xlu1 %v2083_v12, 320  ;;  %2584 = vlog2.f32 %v440_v58  ;;  %vm3506_vm15 = vcmp.lt.f32.partialorder %v446_v2, 0.0004427343 }
 0x1c5   : > { %v3470_v60 = vpop.eup %2564 }
 0x1c6   : > { %v431_v16 = vadd.f32 1.0, %v3470_v60  ;;  %v3475_v20 = vpop.eup %2566  ;;  %v434_v53 = vmul.f32 -0.5, %v3470_v60  ;;  %v437_v7 = vand.u32 2147483647, %v3470_v60 }
 0x1c7   : > { %v3477_v47 = vpop.eup %2568  ;;  %v458_v50 = vadd.f32 1.0, %v3475_v20  ;;  %v461_v56 = vmul.f32 -0.5, %v3475_v20 }
 0x1c8   : > { %2129 = vbcast.lane.b32.xlu0 %v2083_v12, 344  ;;  %2125 = vbcast.lane.b32.xlu1 %v2083_v12, 336  ;;  %2586 = vlog2.f32 %v431_v16  ;;  %v3480_v29 = vpop.eup %2570  ;;  %v449_v30 = vadd.f32 1.0, %v3477_v47  ;;  %v452_v9 = vmul.f32 -0.5, %v3477_v47  ;;  %v435_v58 = vadd.f32 1.0, %v434_v53 }
 0x1c9   : > { %v3483_v36 = vpop.eup %2572  ;;  %v476_v39 = vadd.f32 1.0, %v3480_v29  ;;  %v462_v49 = vadd.f32 1.0, %v461_v56  ;;  %vm3514_vm14 = vcmp.lt.f32.partialorder %v437_v7, 0.0004427343  ;;  %v455_v2 = vand.u32 2147483647, %v3477_v47 }
 0x1ca   : > { %v467_v34 = vadd.f32 1.0, %v3483_v36  ;;  %v473_v15 = vand.u32 2147483647, %v3483_v36 }
 0x1cb   : > { %v3524_v7 = vmul.f32 %v3475_v20, %v462_v49  ;;  %vm3546_vm12 = vcmp.lt.f32.partialorder %v455_v2, 0.0004427343 }
 0x1cc   : > { %2137 = vbcast.lane.b32.xlu0 %v2083_v12, 360  ;;  %2133 = vbcast.lane.b32.xlu1 %v2083_v12, 352  ;;  %vm3577_vm10 = vcmp.lt.f32.partialorder %v473_v15, 0.0004427343 }
 0x1d0   : > { %2145 = vbcast.lane.b32.xlu0 %v2083_v12, 376  ;;  %2141 = vbcast.lane.b32.xlu1 %v2083_v12, 368  ;;  %v377_v12 = vand.u32 2147483647, %v3078_v54 }
 0x1d2   : > { %v393_v3 = vsub.f32 0.0, %v377_v12  ;;  %v3485_v12 = vpop.eup %2574 }
 0x1d3   : > { %v3489_v55 = vpop.eup %2576  ;;  %v494_v13 = vadd.f32 1.0, %v3485_v12 }
 0x1d4   : > { %v419_v21 = vmul.f32 1.442695, %v393_v3  ;;  %v444_v3 = vadd.f32 1.0, %v443_v38  ;;  %v485_v16 = vadd.f32 1.0, %v3489_v55  ;;  %v470_v38 = vmul.f32 -0.5, %v3483_v36 }
 0x1d6   : > { %2588 = vpow2.f32 %v419_v21  ;;  %v3498_v21 = vpop.eup %2578 }
 0x1d7   : > { %2590 = vpow2.f32 %v425_v22  ;;  %v3502_v25 = vpop.eup %2580 }
 0x1d8   : > { %2592 = vpow2.f32 %v423_v23  ;;  %v479_v23 = vmul.f32 -0.5, %v3480_v29  ;;  %v503_v46 = vadd.f32 1.0, %v3502_v25 }
 0x1d9   : > { %2594 = vlog2.f32 %v458_v50  ;;  %v3504_v50 = vmul.f32 %v2563_v19, %v444_v3  ;;  %v453_v19 = vadd.f32 1.0, %v452_v9  ;;  %v436_v3 = vmul.f32 %v3470_v60, %v435_v58 }
 0x1da   : > { %2596 = vlog2.f32 %v449_v30  ;;  %v480_v18 = vadd.f32 1.0, %v479_v23  ;;  %v482_v9 = vand.u32 2147483647, %v3480_v29  ;;  %v497_v60 = vmul.f32 -0.5, %v3485_v12 }
 0x1db   : > { %2598 = vpow2.f32 %v429_v42  ;;  %v512_v42 = vadd.f32 1.0, %v3498_v21  ;;  %v488_v58 = vmul.f32 -0.5, %v3489_v55  ;;  %v3540_v49 = vmul.f32 %v3477_v47, %v453_v19 }
 0x1dc   : > { %2600 = vpow2.f32 %v427_v8  ;;  %v3512_v8 = vpop.eup %2582  ;;  %v3553_v47 = vmul.f32 %v3480_v29, %v480_v18  ;;  %v498_v2 = vadd.f32 1.0, %v497_v60  ;;  %vm3566_vm11 = vcmp.lt.f32.partialorder %v482_v9, 0.0004427343 }
 0x1dd   : > { %2602 = vlog2.f32 %v476_v39  ;;  %v464_v39 = vand.u32 2147483647, %v3475_v20  ;;  %v489_v37 = vadd.f32 1.0, %v488_v58  ;;  %v518_v19 = vand.u32 2147483647, %v3498_v21 }
 0x1de   : > { %2604 = vlog2.f32 %v467_v34  ;;  %v2585_v34 = vpop.eup %2584 }
 0x1df   : > { %2606 = vlog2.f32 %v494_v13  ;;  %v2587_v22 = vpop.eup %2586  ;;  %v471_v13 = vadd.f32 1.0, %v470_v38  ;;  %v442_v51 = vmul.f32 0.6931472, %v2585_v34  ;;  %vm3535_vm13 = vcmp.lt.f32.partialorder %v464_v39, 0.0004427343 }
 0x1e0   : > { %2608 = vlog2.f32 %v485_v16  ;;  %v433_v38 = vmul.f32 0.6931472, %v2587_v22  ;;  %v500_v34 = vand.u32 2147483647, %v3485_v12  ;;  %v530_v39 = vadd.f32 1.0, %v3512_v8 }
 0x1e1   : > { %2610 = vlog2.f32 %v512_v42  ;;  %v3558_v22 = vmul.f32 %v3483_v36, %v471_v13  ;;  %v448_v18 = vsel %vm3506_vm15, %v3504_v50, %v442_v51  ;;  %v515_v36 = vmul.f32 -0.5, %v3498_v21 }
 0x1e2   : > { %2612 = vlog2.f32 %v503_v46  ;;  %v491_v46 = vand.u32 2147483647, %v3489_v55  ;;  %v439_v60 = vsel %vm3514_vm14, %v436_v3, %v433_v38  ;;  %vm3581_vm15 = vcmp.lt.f32.partialorder %v500_v34, 0.0004427343 }
 0x1e3   : > { %v3528_v56 = vpop.eup %2588  ;;  %2614 = vlog2.f32 %v530_v39  ;;  %v3592_v15 = vmul.f32 %v3489_v55, %v489_v37  ;;  %v506_v34 = vmul.f32 -0.5, %v3502_v25  ;;  %v3858_v39 = vmax.f32 %v2961_v6, 0.0 }
 0x1e4   : > { %v3533_v16 = vpop.eup %2590  ;;  %v521_v23 = vadd.f32 1.0, %v3528_v56  ;;  %vm3600_vm14 = vcmp.lt.f32.partialorder %v491_v46, 0.0004427343  ;;  %v516_v14 = vadd.f32 1.0, %v515_v36  ;;  %vm3612_vm9 = vcmp.lt.f32.partialorder %v518_v19, 0.0004427343 }
 0x1e5   : > { %v3544_v44 = vpop.eup %2592  ;;  %v548_v50 = vadd.f32 1.0, %v3533_v16  ;;  %v576_v45 = vadd.f32 %v448_v18, %v3858_v39  ;;  %v3865_v19 = vmax.f32 %v2988_v28, 0.0  ;;  %v524_v28 = vmul.f32 -0.5, %v3528_v56 }
 0x1e6   : > { %v2595_v61 = vpop.eup %2594  ;;  %2616 = vlog2.f32 %v521_v23  ;;  %v539_v53 = vadd.f32 1.0, %v3544_v44  ;;  %v3621_v57 = vmul.f32 %v3498_v21, %v516_v14  ;;  %v3871_v23 = vmax.f32 %v3051_v43, 0.0 }
 0x1e7   : > { %v2597_v32 = vpop.eup %2596  ;;  %v460_v58 = vmul.f32 0.6931472, %v2595_v61  ;;  %v3589_v61 = vmul.f32 %v3485_v12, %v498_v2  ;;  %v509_v12 = vand.u32 2147483647, %v3502_v25  ;;  %2618 = vlog2.f32 %v548_v50 }
 0x1e8   : > { %v3561_v42 = vpop.eup %2598  ;;  %v451_v9 = vmul.f32 0.6931472, %v2597_v32  ;;  %v3859_v32 = vmax.f32 %v2929_v48, 0.0  ;;  %2620 = vlog2.f32 %v539_v53  ;;  %v507_v50 = vadd.f32 1.0, %v506_v34 }
 0x1e9   : > { %v3573_v13 = vpop.eup %2600  ;;  %v466_v37 = vsel %vm3535_vm13, %v3524_v7, %v460_v58  ;;  %v566_v6 = vadd.f32 1.0, %v3561_v42 }
 0x1ea   : > { %v2603_v30 = vpop.eup %2602  ;;  %v575_v17 = vadd.f32 %v439_v60, %v3859_v32  ;;  %v457_v46 = vsel %vm3546_vm12, %v3540_v49, %v451_v9  ;;  %v557_v20 = vadd.f32 1.0, %v3573_v13  ;;  %v3864_v32 = vmax.f32 %v3013_v1, 0.0 }
 0x1eb   : > { %v2605_v3 = vpop.eup %2604  ;;  %v478_v55 = vmul.f32 0.6931472, %v2603_v30  ;;  %v533_v30 = vmul.f32 -0.5, %v3512_v8  ;;  %v362_v49 = vmax.f32 %v3071_v59, 0.0  ;;  %v577_v9 = vadd.f32 %v457_v46, %v3865_v19 }
 0x1ec   : > { %v2607_v2 = vpop.eup %2606  ;;  %v469_v60 = vmul.f32 0.6931472, %v2605_v3  ;;  %v578_v38 = vadd.f32 %v466_v37, %v3864_v32  ;;  %2622 = vlog2.f32 %v566_v6  ;;  %vm3632_vm12 = vcmp.lt.f32.partialorder %v509_v12, 0.0004427343 }
 0x1ed   : > { %v2609_v18 = vpop.eup %2608  ;;  %v496_v40 = vmul.f32 0.6931472, %v2607_v2  ;;  %2624 = vlog2.f32 %v557_v20  ;;  %v534_v37 = vadd.f32 1.0, %v533_v30  ;;  %v551_v12 = vmul.f32 -0.5, %v3533_v16 }
 0x1ee   : > { %v2611_v53 = vpop.eup %2610  ;;  %v475_v14 = vsel %vm3577_vm10, %v3558_v22, %v469_v60  ;;  %v536_v22 = vand.u32 2147483647, %v3512_v8  ;;  %v525_v60 = vadd.f32 1.0, %v524_v28  ;;  %v527_v20 = vand.u32 2147483647, %v3528_v56 }
 0x1ef   : > { %v2613_v34 = vpop.eup %2612  ;;  %v502_v35 = vsel %vm3581_vm15, %v3589_v61, %v496_v40  ;;  %v361_v61 = vmax.f32 %v3078_v54, 0.0  ;;  %v552_v19 = vadd.f32 1.0, %v551_v12 }
 0x1f0   : > { %v505_v40 = vmul.f32 0.6931472, %v2613_v34  ;;  %v526_v34 = vmul.f32 %v3528_v56, %v525_v60  ;;  %vm3668_vm10 = vcmp.lt.f32.partialorder %v536_v22, 0.0004427343  ;;  %v563_v60 = vand.u32 2147483647, %v3573_v13 }
 0x1f1   : > { %v553_v21 = vmul.f32 %v3533_v16, %v552_v19 }
 0x226   : > { %v2090_v39 = vpop.permute.xlu0 %2089  ;;  %v2086_v48 = vpop.permute.xlu1 %2085 }
 0x227   : > { %v2164_v7 = vsub.f32 %v576_v45, %v2090_v39  ;;  %v2163_v58 = vsub.f32 %v575_v17, %v2086_v48  ;;  %v484_v17 = vsel %vm3566_vm11, %v3553_v47, %v478_v55  ;;  %v487_v45 = vmul.f32 0.6931472, %v2609_v18  ;;  %v2615_v48 = vpop.eup %2614 }
 0x228   : > { %v508_v47 = vmul.f32 %v3502_v25, %v507_v50  ;;  %v3868_v55 = vmax.f32 %v3039_v27, 0.0  ;;  %v3869_v18 = vmax.f32 %v3043_v31, 0.0  ;;  %v514_v39 = vmul.f32 0.6931472, %v2611_v53 }
 0x229   : > { %2208 = vperm.xlu0 %2560, %v2164_v7   ;;  %2205 = vperm.xlu1 %2561, %v2163_v58   ;;  %v493_v25 = vsel %vm3600_vm14, %v3592_v15, %v487_v45  ;;  %v542_v27 = vmul.f32 -0.5, %v3544_v44  ;;  %v2617_v7 = vpop.eup %2616  ;;  %v3870_v50 = vmax.f32 %v3048_v41, 0.0  ;;  %v535_v15 = vmul.f32 %v3512_v8, %v534_v37 }
 0x22a   : > { %v2098_v1 = vpop.permute.xlu0 %2097  ;;  %v2094_v3 = vpop.permute.xlu1 %2093  ;;  %v580_v6 = vadd.f32 %v484_v17, %v3868_v55  ;;  %v581_v32 = vadd.f32 %v493_v25, %v3871_v23  ;;  %v569_v17 = vmul.f32 -0.5, %v3561_v42  ;;  %v520_v54 = vsel %vm3612_vm9, %v3621_v57, %v514_v39 }
 0x22b   : > { %v2166_v2 = vsub.f32 %v578_v38, %v2098_v1  ;;  %v2165_v29 = vsub.f32 %v577_v9, %v2094_v3  ;;  %v579_v38 = vadd.f32 %v475_v14, %v3869_v18  ;;  %v582_v30 = vadd.f32 %v502_v35, %v3870_v50  ;;  %v2619_v8 = vpop.eup %2618  ;;  %v3886_v18 = vld [vmem:[#allocation12_spill] sm:$0xff] }
 0x22c   : > { %v554_v9 = vand.u32 2147483647, %v3533_v16  ;;  %v543_v45 = vadd.f32 1.0, %v542_v27  ;;  %v545_v41 = vand.u32 2147483647, %v3544_v44  ;;  %v560_v53 = vmul.f32 -0.5, %v3573_v13 }
 0x22d   : > { %2214 = vperm.xlu0 %2560, %v2166_v2   ;;  %2211 = vperm.xlu1 %2561, %v2165_v29   ;;  %v511_v3 = vsel %vm3632_vm12, %v508_v47, %v505_v40  ;;  %v532_v14 = vmul.f32 0.6931472, %v2615_v48  ;;  %v523_v28 = vmul.f32 0.6931472, %v2617_v7  ;;  %v2621_v2 = vpop.eup %2620  ;;  %vm3672_vm9 = vcmp.lt.f32.partialorder %v527_v20, 0.0004427343 }
 0x22e   : > { %v2106_v46 = vpop.permute.xlu0 %2105  ;;  %v2102_v51 = vpop.permute.xlu1 %2101  ;;  %v3876_v55 = vmax.f32 %v3056_v52, 0.0  ;;  %vm3679_vm11 = vcmp.lt.f32.partialorder %v554_v9, 0.0004427343  ;;  %v570_v56 = vadd.f32 1.0, %v569_v17  ;;  %v3879_v35 = vmax.f32 %v3064_v26, 0.0 }
 0x22f   : > { %v2168_v58 = vsub.f32 %v580_v6, %v2106_v46  ;;  %v2167_v31 = vsub.f32 %v579_v38, %v2102_v51  ;;  %v544_v12 = vmul.f32 %v3544_v44, %v543_v45  ;;  %vm3686_vm13 = vcmp.lt.f32.partialorder %v545_v41, 0.0004427343  ;;  %v2623_v38 = vpop.eup %2622 }
 0x230   : > { %v584_v6 = vadd.f32 %v520_v54, %v3876_v55  ;;  %v583_v22 = vadd.f32 %v511_v3, %v3879_v35  ;;  %v561_v52 = vadd.f32 1.0, %v560_v53  ;;  %v538_v39 = vsel %vm3668_vm10, %v535_v15, %v532_v14  ;;  %v2625_v26 = vpop.eup %2624 }
 0x231   : > { %2220 = vperm.xlu0 %2560, %v2168_v58   ;;  %2217 = vperm.xlu1 %2561, %v2167_v31   ;;  %v529_v27 = vsel %vm3672_vm9, %v526_v34, %v523_v28  ;;  %v550_v48 = vmul.f32 0.6931472, %v2619_v8  ;;  %v541_v46 = vmul.f32 0.6931472, %v2621_v2  ;;  %v572_v44 = vand.u32 2147483647, %v3561_v42 }
 0x232   : > { %v2114_v1 = vpop.permute.xlu0 %2113  ;;  %v2110_v43 = vpop.permute.xlu1 %2109  ;;  %v364_v20 = vmax.f32 %v3086_v4, 0.0  ;;  %v571_v7 = vmul.f32 %v3561_v42, %v570_v56  ;;  %v586_v58 = vadd.f32 %v538_v39, %v362_v49  ;;  %v585_v31 = vadd.f32 %v529_v27, %v361_v61  ;;  %v3888_v39 = vld [vmem:[#allocation14_spill] sm:$0xff] }
 0x233   : > { %v2170_v29 = vsub.f32 %v582_v30, %v2114_v1  ;;  %v2169_v37 = vsub.f32 %v581_v32, %v2110_v43  ;;  %v363_v50 = vmax.f32 %v3090_v10, 0.0  ;;  %v562_v30 = vmul.f32 %v3573_v13, %v561_v52  ;;  %v3895_v10 = vld [vmem:[#allocation18_spill] sm:$0xff] }
 0x234   : > { %v556_v32 = vsel %vm3679_vm11, %v553_v21, %v550_v48  ;;  %v547_v4 = vsel %vm3686_vm13, %v544_v12, %v541_v46  ;;  %v568_v19 = vmul.f32 0.6931472, %v2623_v38  ;;  %v559_v42 = vmul.f32 0.6931472, %v2625_v26 }
 0x235   : > { %2226 = vperm.xlu0 %2560, %v2170_v29   ;;  %2223 = vperm.xlu1 %2561, %v2169_v37   ;;  %vm3706_vm15 = vcmp.lt.f32.partialorder %v572_v44, 0.0004427343  ;;  %vm3710_vm14 = vcmp.lt.f32.partialorder %v563_v60, 0.0004427343  ;;  %v588_v13 = vadd.f32 %v556_v32, %v364_v20  ;;  %v587_v49 = vadd.f32 %v547_v4, %v363_v50  ;;  %v3891_v20 = vld [vmem:[#allocation10_spill] sm:$0xff]  ;;  %v3893_v32 = vld [vmem:[#allocation19_spill] sm:$0xff] }
 0x236   : > { %v2122_v25 = vpop.permute.xlu0 %2121  ;;  %v2118_v16 = vpop.permute.xlu1 %2117  ;;  %v574_v45 = vsel %vm3706_vm15, %v571_v7, %v568_v19  ;;  %v565_v41 = vsel %vm3710_vm14, %v562_v30, %v559_v42  ;;  %v366_v1 = vmax.f32 %v3093_v11, 0.0  ;;  %v365_v43 = vmax.f32 %v3106_v24, 0.0 }
 0x237   : > { %v2172_v51 = vsub.f32 %v584_v6, %v2122_v25  ;;  %v2171_v40 = vsub.f32 %v583_v22, %v2118_v16  ;;  %v3887_v25 = vld [vmem:[#allocation13_spill] sm:$0xff]  ;;  %v2183_v7 = vmul.u32 128, %v3891_v20 }
 0x238   : > { %v590_v3 = vadd.f32 %v574_v45, %v366_v1  ;;  %v589_v14 = vadd.f32 %v565_v41, %v365_v43  ;;  %v3898_v45 = vld [vmem:[#allocation11_spill] sm:$0xff]  ;;  %v3900_v43 = vld [vmem:[#allocation22_spill] sm:$0xff] }
 0x239   : > { %2232 = vperm.xlu0 %2560, %v2172_v51   ;;  %2229 = vperm.xlu1 %2561, %v2171_v40   ;;  %v3890_v40 = vld [vmem:[#allocation17_spill] sm:$0xff] }
 0x23a   : > { %v2130_v15 = vpop.permute.xlu0 %2129  ;;  %v2126_v23 = vpop.permute.xlu1 %2125 }
 0x23b   : > { %v2174_v9 = vsub.f32 %v586_v58, %v2130_v15  ;;  %v2173_v17 = vsub.f32 %v585_v31, %v2126_v23  ;;  %v2184_v31 = vstv %s2467_s16  ;;  %v3892_v15 = vld [vmem:[#allocation16_spill] sm:$0xff] }
 0x23c   : > { %v2185_v42 = vadd.s32 %v2184_v31, %v2183_v7 }
 0x23d   : > { %2238 = vperm.xlu0 %2560, %v2174_v9   ;;  %2235 = vperm.xlu1 %2561, %v2173_v17  }
 0x23e   : > { %v2138_v61 = vpop.permute.xlu0 %2137  ;;  %v2134_v54 = vpop.permute.xlu1 %2133  ;;  %v2186_v41 = vadd.s32 %v2185_v42, %v3898_v45 }
 0x23f   : > { %v2176_v53 = vsub.f32 %v588_v13, %v2138_v61  ;;  %v2175_v8 = vsub.f32 %v587_v49, %v2134_v54  ;;  %v3896_v49 = vld [vmem:[#allocation20_spill] sm:$0xff] }
 0x241   : > { %2244 = vperm.xlu0 %2560, %v2176_v53   ;;  %2241 = vperm.xlu1 %2561, %v2175_v8  }
 0x242   : > { %v2146_v28 = vpop.permute.xlu0 %2145  ;;  %v2142_v34 = vpop.permute.xlu1 %2141 }
 0x243   : > { %v2178_v2 = vsub.f32 %v590_v3, %v2146_v28  ;;  %v2177_v29 = vsub.f32 %v589_v14, %v2142_v34  ;;  %v3901_v14 = vld [vmem:[#allocation21_spill] sm:$0xff] }
 0x245   : > { %2250 = vperm.xlu0 %2560, %v2178_v2   ;;  %2247 = vperm.xlu1 %2561, %v2177_v29  }
 0x2a4   : > { %v2209_v37 = vpop.permute.xlu0 %2208  ;;  %v2206_v36 = vpop.permute.xlu1 %2205 }
 0x2a5   : > { %v2259_v57 = vrot.slane %v2209_v37, %v3354_v33  ;;  %v2255_v55 = vrot.slane %v2206_v36, %v3363_v63 }
 0x2a7   : > { %v2260_v21 = vsel %vm1963_vm0, %v2259_v57, %v2255_v55  ;;  %vm3894_vm0 = vcmask 720512  }
 0x2a8   : > { %v2215_v6 = vpop.permute.xlu0 %2214  ;;  %v2212_v11 = vpop.permute.xlu1 %2211 }
 0x2a9   : > { %v2264_v24 = vrot.slane %v2212_v11, %v3358_v62  ;;  %v2269_v47 = vrot.slane %v2215_v6, %v3366_v0 }
 0x2ab   : > { %v2265_v56 = vsel %vm1970_vm1, %v2264_v24, %v2260_v21  ;;  %vm3897_vm1 = vcmask 786112  }
 0x2ac   : > { %v2221_v35 = vpop.permute.xlu0 %2220  ;;  %v2218_v22 = vpop.permute.xlu1 %2217  ;;  %v2270_v33 = vsel %vm1977_vm2, %v2269_v47, %v2265_v56  ;;  %vm3899_vm2 = vcmask 851712  }
 0x2ad   : > { %v2274_v12 = vrot.slane %v2218_v22, %v3370_v5  ;;  %v2279_v52 = vrot.slane %v2221_v35, %v3886_v18  ;;  %v3889_v5 = vld [vmem:[#allocation15_spill] sm:$0xff] }
 0x2af   : > { %v2275_v63 = vsel %vm1984_vm3, %v2274_v12, %v2270_v33  ;;  %vm2187_vm3 = vcmp.lt.s32.totalorder %v2186_v41, 8 }
 0x2b0   : > { %v2227_v38 = vpop.permute.xlu0 %2226  ;;  %v2224_v62 = vpop.permute.xlu1 %2223  ;;  %v2280_v27 = vsel %vm1991_vm4, %v2279_v52, %v2275_v63  ;;  %vm3902_vm4 = vcmask 917312  }
 0x2b1   : > { %v2284_v16 = vrot.slane %v2224_v62, %v3887_v25  ;;  %v2289_v0 = vrot.slane %v2227_v38, %v3888_v39 }
 0x2b3   : > { %v2285_v48 = vsel %vm1998_vm5, %v2284_v16, %v2280_v27  ;;  %vm3903_vm5 = vcmask 982912  }
 0x2b4   : > { %v2233_v46 = vpop.permute.xlu0 %2232  ;;  %v2230_v26 = vpop.permute.xlu1 %2229  ;;  %v2290_v60 = vsel %vm2005_vm6, %v2289_v0, %v2285_v48  ;;  %vm2334_vm6 = vcmask 1040384  }
 0x2b5   : > { %v2294_v51 = vrot.slane %v2230_v26, %v3889_v5  ;;  %v2299_v44 = vrot.slane %v2233_v46, %v3890_v40 }
 0x2b7   : > { %v2295_v58 = vsel %vm2012_vm7, %v2294_v51, %v2290_v60  ;;  %vm3904_vm7 = vcmask 1048512  }
 0x2b8   : > { %v2239_v50 = vpop.permute.xlu0 %2238  ;;  %v2236_v30 = vpop.permute.xlu1 %2235  ;;  %v2300_v19 = vsel %vm2019_vm8, %v2299_v44, %v2295_v58 }
 0x2b9   : > { %v2304_v23 = vrot.slane %v2236_v30, %v3892_v15  ;;  %v2309_v4 = vrot.slane %v2239_v50, %v3893_v32 }
 0x2bb   : > { %v2305_v9 = vsel %vm3894_vm0, %v2304_v23, %v2300_v19 }
 0x2bc   : > { %v2245_v17 = vpop.permute.xlu0 %2244  ;;  %v2242_v59 = vpop.permute.xlu1 %2241  ;;  %v2310_v54 = vsel %vm3897_vm1, %v2309_v4, %v2305_v9 }
 0x2bd   : > { %v2314_v13 = vrot.slane %v2242_v59, %v3895_v10  ;;  %v2319_v61 = vrot.slane %v2245_v17, %v3896_v49 }
 0x2bf   : > { %v2315_v53 = vsel %vm3899_vm2, %v2314_v13, %v2310_v54 }
 0x2c0   : > { %v2251_v8 = vpop.permute.xlu0 %2250  ;;  %v2248_v1 = vpop.permute.xlu1 %2247  ;;  %v2320_v34 = vsel %vm3902_vm4, %v2319_v61, %v2315_v53 }
 0x2c1   : > { %v2329_v3 = vrot.slane %v2251_v8, %v3900_v43  ;;  %v2324_v28 = vrot.slane %v2248_v1, %v3901_v14 }
 0x2c3   : > { %v2325_v2 = vsel %vm3903_vm5, %v2324_v28, %v2320_v34 }
 0x2c4   : > { %v2330_v29 = vsel %vm3904_vm7, %v2329_v3, %v2325_v2 }
 0x2c5   : > { %v2332_v37 = vsel %vm2187_vm3, %v2330_v29, 0.0 }
 0x2c6   : > { %v2335_v36 = vsel %vm2334_vm6, %v2332_v37, 0.0 }
 0x2c7   : > { %2336 = vadd.xlane.f32.xlu1 %v2335_v36 }
 0x350   : > { %v2337_v57 = vpop.xlane.xlu1 %2336 }
 0x351   : > { %v2338_v55 = vrot.slane %v2337_v57, 4 }
 0x353   : > { %v2339_v6 = vadd.f32 %v2338_v55, %v2337_v57 }
 0x355   : > { %v2340_v11 = vrot.slane %v2339_v6, 2 }
 0x357   : > { %v2341_v24 = vadd.f32 %v2340_v11, %v2339_v6 }
 0x359   : > { %v2342_v21 = vrot.slane %v2341_v24, 1 }
 0x35b   : > { %v2343_v47 = vadd.f32 %v2342_v21, %v2341_v24 }
 0x35d   : > { %2473 = vpush %v2343_v47 }
 0x38e   : > { %s2474_s29 = spop %2473 }
 0x38f   : > { %v2345_v56 = vstv %s2474_s29 }
 0x390   : > { %2347 = vst [vmem:[%s241_s25] sm:$0xff] %v2345_v56 }
 0x391   : > { %2665 = shalt.err (!%p2662_p9)
}
 0x392   : > { %s2666_s22 = scalar_lea.hbm %s2360_s10, 128  ;;  %s2670_s16 = scalar_lea.hbm %s3806_s4, 256 }
 0x393   : > { %p2667_p10 = scmp.ne.s32.totalorder %s2360_s10, %s2666_s22  ;;  %p2671_p6 = scmp.lt.s32.totalorder %s2360_s10, %s3806_s4 }
 0x394   : > { %p2672_p2 = scmp.lt.s32.totalorder %s2670_s16, %s2666_s22 }
 0x395   : > { %p2668_p11 = pnand %p2667_p10, %p2855_p12 }
 0x396   : > { %p2673_p3 = por %p2672_p2, %p2671_p6 }
 0x397   : > { %p2669_p1 = pneg %p2668_p11 }
 0x399   : > { %p2674_p0 = pnand %p2673_p3, %p2669_p1 }
 0x39b   : > { %2677 = shalt.err (!%p2674_p0)
}
 0x39c   : > { %2476 = dma.vmem_to_hbm [thread:$0]  (%p2855_p12), %s2363_s27, 128, %s2360_s10, %s2349_s9  }
 0x39d PF: > { %s2374_s25 = sand.u32 1, %s2727_s17   ;;  %p3905_p5 = scmp.ge.s32.totalorder %s2755_s24, 2 }
 0x39e   : > { %s2375_s29 = scalar_lea.sflag [#allocation6], %s2374_s25 }
 0x39f   : > { %p2479_p7 = pnand %p3905_p5, %p2859_p13 }
 0x3a1   : > { %p2480_p4 = pneg %p2479_p7 }
 0x3a3   : > { %2719 = dma.done.wait (%p2480_p4), %s2375_s29, 128  }
 0x3a4   : > { %2721 = vsyncadd (%p2480_p4), %s2375_s29, 4294967168  ;;  %s21_s24 = sadd.s32 1, %s2755_s24   ;;  %s3906_s17 = smov %s2731_s18 }
 0x3a5   : > { %p18_p8 = scmp.ge.s32.totalorder %s21_s24, 4   ;;  %s3907_s18 = smov %s2735_s19 }
 0x3a6   : > { %s3908_s19 = smov %s2849_s5  ;;  %s3909_s20 = smov %s2743_s21 }
 0x3a7   : > { %s3792_s21 = smov 0   ;;  %s3910_s22 = smov %s2751_s23 }
 0x3a8   : > { %s3911_s23 = smov %s3913_s26  ;;  %20 = sbr.rel (!%p18_p8) target bundleno = 9 (0x9), region = 84 }
 0x3ad   :  { %2380 = vsyncpa [#allocation5], 1 }
 0x3ae   :  { %2382 = vsyncpa [#allocation5 + $0x1], 1 }
 0x3af   :  { %2383 = vsyncpa [#allocation6], 1 }
 0x3b0   :  { %2385 = vsyncpa [#allocation6 + $0x1], 1 }

</bundles_post_ra>
